<compile_context>
chip_gen: v7x
topology: tpu7x:2x2x1
jax: 0.10.0
libtpu: 0.0.40
codegen_flags: <defaults>
</compile_context>

<pallas_src>
import jax
import jax.numpy as jnp
from jax import lax
from jax.experimental import pallas as pl
from jax.experimental.pallas import tpu as pltpu
import numpy as np


# ------------------------------ host helpers ------------------------------ #

def _pick_row_tile(ho: int) -> int:
    """Largest even divisor of `ho` that leaves >= 2 row blocks (else ho)."""
    for th in range(ho // 2, 1, -1):
        if ho % th == 0 and th % 2 == 0:
            return th
    return ho


# ------------------------------ main wrapper ------------------------------ #

def upsample_conv2d(x, w, b, *, compute_dtype=jnp.float32, out_dtype=None):
    """cat([x]*4,1) -> DepthToSpace(2) -> Conv2d(VALID).

    x: (N, C, H, W), w: (F, C, K, K), b: (F,).  Returns (N, F, 2H-K+1, 2W-K+1).
    """
    N, C, H, W = x.shape
    F, Cw, K, K2 = w.shape
    assert Cw == C and K == K2
    Hp, Wp = 2 * H, 2 * W
    Ho, Wo = Hp - K + 1, Wp - K + 1
    assert Ho > 0 and Wo > 0
    KKC = K * K * C
    HC = H * C
    out_dtype = x.dtype if out_dtype is None else out_dtype

    th = _pick_row_tile(Ho)                 # output rows per grid step
    R = Ho // th                            # row blocks per batch
    nx = (th + K - 2) // 2 + 1              # x rows feeding one row block
    nxc = nx * C

    # ---- cheap host-side prep (one fused pass over the *small* inputs) ----
    # (h, c)-major row ordering -> each conv tap is a contiguous C-row slab.
    # The dtype cast happens in the same pass (review: cast early).
    xr = jnp.transpose(x, (0, 2, 1, 3)).reshape(N, HC, W).astype(compute_dtype)
    # 0/1 column-repeat matrix: cmat[w, q] = (q // 2 == w)  (2x NN upsample
    # along lanes, executed as one small MXU dot inside the kernel).
    cmat = (jnp.arange(Wp)[None, :] // 2
            == jnp.arange(W)[:, None]).astype(compute_dtype)
    # w_flat[f, (kh*K + kw)*C + c] = w[f, c, kh, kw]
    w_flat = jnp.transpose(w, (0, 2, 3, 1)).reshape(F, KKC).astype(compute_dtype)
    b2 = b.reshape(F, 1).astype(jnp.float32)

    # ------------------------------- kernel ------------------------------- #
    def kernel(x_ref, cmat_ref, w_ref, b_ref, o_ref):
        r = pl.program_id(1)
        # First x row (in (h, c)-flattened coords) needed by this row block.
        row0 = pl.multiple_of(r * ((th // 2) * C), C)
        xwin = x_ref[0, pl.ds(row0, nxc), :]                        # (nx*C, W)
        # 2x upsample along W (lanes) via the resident 0/1 repeat matrix.
        xcu = jnp.dot(xwin, cmat_ref[...],
                      preferred_element_type=jnp.float32).astype(xwin.dtype)   # (nx*C, 2W)
        wmat = w_ref[...]                                           # (F, K*K*C)
        bias = b_ref[...]                                           # (F, 1) f32

        for t in range(th):                                         # static unroll
            pieces = []
            for kh in range(K):
                lr = (t + kh) // 2                                   # row upsample (static)
                slab = xcu[lr * C:(lr + 1) * C, :]                   # (C, 2W)
                for kw in range(K):
                    pieces.append(slab[:, kw:kw + Wo])               # (C, Wo)
            rhs = jnp.concatenate(pieces, axis=0)                    # (K*K*C, Wo)
            acc = jnp.dot(wmat, rhs, preferred_element_type=jnp.float32)  # (F, Wo)
            o_ref[0, :, 0, t, :] = (acc + bias).astype(o_ref.dtype)

    out5 = pl.pallas_call(
        kernel,
        out_shape=jax.ShapeDtypeStruct((N, F, R, th, Wo), out_dtype),
        grid_spec=pltpu.PrefetchScalarGridSpec(
            num_scalar_prefetch=0,
            grid=(N, R),
            in_specs=[
                pl.BlockSpec((1, HC, W), lambda n, r: (n, 0, 0)),   # x[n], resident across r
                pl.BlockSpec((W, Wp), lambda n, r: (0, 0)),         # repeat matrix, resident
                pl.BlockSpec((F, KKC), lambda n, r: (0, 0)),        # weights, resident
                pl.BlockSpec((F, 1), lambda n, r: (0, 0)),          # bias, resident
            ],
            out_specs=pl.BlockSpec((1, F, 1, th, Wo),
                                   lambda n, r: (n, 0, r, 0, 0)),
        ),
        compiler_params=pltpu.CompilerParams(
            dimension_semantics=("parallel", "parallel")),
    )(xr, cmat, w_flat, b2)

    # (N, F, R, th, Wo) -> (N, F, Ho, Wo): adjacent-dim merge, free (no transpose).
    return out5.reshape(N, F, Ho, Wo)


# --------------------- independent pure-JAX reference --------------------- #
# Literal transcription of the PyTorch module (cat x4 -> DepthToSpace -> Conv2d)
# so the kernel's upsample shortcut is verified against the original op sequence.

def _depth_to_space_torch_ref(x_nchw, block_size=2):
    out = jnp.transpose(x_nchw, (0, 2, 3, 1))                       # permute(0,2,3,1)
    batch, d_h, d_w, d_depth = out.shape
    bs = block_size
    bs2 = bs * bs
    assert d_depth % bs2 == 0
    s_depth = d_depth // bs2
    s_width = d_w * bs
    s_height = d_h * bs
    t_1 = out.reshape(batch, d_h, d_w, bs2, s_depth)
    spl = [t_1[:, :, :, i * bs:(i + 1) * bs, :] for i in range(bs2 // bs)]
    stack = [t.reshape(batch, d_h, s_width, s_depth) for t in spl]
    out = jnp.stack(stack, 0)
    out = jnp.swapaxes(out, 0, 1)                                   # .transpose(0, 1)
    out = jnp.transpose(out, (0, 2, 1, 3, 4)).reshape(batch, s_height, s_width, s_depth)
    return jnp.transpose(out, (0, 3, 1, 2))                         # back to NCHW


def _ref_upsample_conv2d(x, w, b):
    x0 = jnp.concatenate([x] * 4, axis=1)
    x1 = _depth_to_space_torch_ref(x0, 2)
    y = lax.conv_general_dilated(
        x1, w, window_strides=(1, 1), padding="VALID",
        dimension_numbers=("NCHW", "OIHW", "NCHW"))
    return y + b[None, :, None, None]


# ---------------------------------- test ---------------------------------- #

if __name__ == "__main__":
    key = jax.random.PRNGKey(0)
    kx, kw_key, kb = jax.random.split(key, 3)

    # input_channels=4, filter_size=3, n_filters=8
    N, C, H, W = 2, 4, 16, 16
    F, K = 8, 3

    x = jax.random.normal(kx, (N, C, H, W), jnp.float32)
    w = jax.random.normal(kw_key, (F, C, K, K), jnp.float32) * 0.1
    b = jax.random.normal(kb, (F,), jnp.float32) * 0.1

    ref = jax.block_until_ready(_ref_upsample_conv2d(x, w, b))

    # Default f32 path: matches PyTorch numerics, tight tolerance.
    y_f32 = jax.block_until_ready(upsample_conv2d(x, w, b))
    assert y_f32.shape == ref.shape == (N, F, 2 * H - K + 1, 2 * W - K + 1)
    np.testing.assert_allclose(np.asarray(y_f32), np.asarray(ref), atol=1e-4, rtol=1e-4)

    # Opt-in bf16 operand path (f32 MXU accumulation) for bandwidth-bound use.
    y_bf16 = jax.block_until_ready(upsample_conv2d(x, w, b, compute_dtype=jnp.bfloat16))
    np.testing.assert_allclose(np.asarray(y_bf16), np.asarray(ref), atol=3e-2, rtol=3e-2)

    print("KERNEL_OK")
</pallas_src>

<mosaic_0001>
module attributes {stable_mosaic.version = 11 : i64} {
  func.func @kernel(%arg0: i32, %arg1: i32, %arg2: memref<1x64x16xf32, #tpu.memory_space<vmem>>, %arg3: memref<16x32xf32, #tpu.memory_space<vmem>>, %arg4: memref<8x36xf32, #tpu.memory_space<vmem>>, %arg5: memref<8x1xf32, #tpu.memory_space<vmem>>, %arg6: memref<1x8x1x10x30xf32, #tpu.memory_space<vmem>>) attributes {dimension_semantics = [#tpu.dimension_semantics<parallel>, #tpu.dimension_semantics<parallel>], iteration_bounds = array<i64: 2, 3>, scalar_prefetch = 0 : i64, scratch_operands = 0 : i64, tpu.core_type = #tpu.core_type<tc>, window_params = [{transform_indices = @transform_0, window_bounds = array<i64: 1, 64, 16>}, {pipeline_mode = #tpu.pipeline_mode<synchronous>, transform_indices = @transform_1, window_bounds = array<i64: 16, 32>}, {pipeline_mode = #tpu.pipeline_mode<synchronous>, transform_indices = @transform_2, window_bounds = array<i64: 8, 36>}, {pipeline_mode = #tpu.pipeline_mode<synchronous>, transform_indices = @transform_3, window_bounds = array<i64: 8, 1>}, {transform_indices = @transform_4, window_bounds = array<i64: 1, 8, 1, 10, 30>}]} {
    %c20_i32 = arith.constant 20 : i32
    %0 = arith.muli %arg1, %c20_i32 : i32
    %1 = tpu.assume_multiple %0, 4 : i32
    %c0 = arith.constant 0 : index
    %2 = arith.index_cast %1 : i32 to index
    %c0_0 = arith.constant 0 : index
    %3 = vector.load %arg2[%c0, %2, %c0_0] : memref<1x64x16xf32, #tpu.memory_space<vmem>>, vector<1x24x16xf32>
    %4 = vector.shape_cast %3 : vector<1x24x16xf32> to vector<24x16xf32>
    %c0_1 = arith.constant 0 : index
    %c0_2 = arith.constant 0 : index
    %5 = vector.load %arg3[%c0_1, %c0_2] : memref<16x32xf32, #tpu.memory_space<vmem>>, vector<16x32xf32>
    %cst = arith.constant dense<0.000000e+00> : vector<24x32xf32>
    %6 = tpu.matmul %4, %5, %cst {dimension_numbers = #tpu.dot_dimension_numbers<[1], [0], [0], [1], [0, 0, 1, 1], [], []>} : vector<24x16xf32>, vector<16x32xf32>, vector<24x32xf32> -> vector<24x32xf32>
    %c0_3 = arith.constant 0 : index
    %c0_4 = arith.constant 0 : index
    %7 = vector.load %arg4[%c0_3, %c0_4] : memref<8x36xf32, #tpu.memory_space<vmem>>, vector<8x36xf32>
    %c0_5 = arith.constant 0 : index
    %c0_6 = arith.constant 0 : index
    %8 = vector.load %arg5[%c0_5, %c0_6] : memref<8x1xf32, #tpu.memory_space<vmem>>, vector<8x1xf32>
    %9 = vector.extract_strided_slice %6 {offsets = [0, 0], sizes = [4, 32], strides = [1, 1]} : vector<24x32xf32> to vector<4x32xf32>
    %10 = vector.extract_strided_slice %9 {offsets = [0, 0], sizes = [4, 30], strides = [1, 1]} : vector<4x32xf32> to vector<4x30xf32>
    %11 = vector.extract_strided_slice %9 {offsets = [0, 1], sizes = [4, 30], strides = [1, 1]} : vector<4x32xf32> to vector<4x30xf32>
    %12 = vector.extract_strided_slice %9 {offsets = [0, 2], sizes = [4, 30], strides = [1, 1]} : vector<4x32xf32> to vector<4x30xf32>
    %13 = vector.extract_strided_slice %6 {offsets = [0, 0], sizes = [4, 32], strides = [1, 1]} : vector<24x32xf32> to vector<4x32xf32>
    %14 = vector.extract_strided_slice %13 {offsets = [0, 0], sizes = [4, 30], strides = [1, 1]} : vector<4x32xf32> to vector<4x30xf32>
    %15 = vector.extract_strided_slice %13 {offsets = [0, 1], sizes = [4, 30], strides = [1, 1]} : vector<4x32xf32> to vector<4x30xf32>
    %16 = vector.extract_strided_slice %13 {offsets = [0, 2], sizes = [4, 30], strides = [1, 1]} : vector<4x32xf32> to vector<4x30xf32>
    %17 = vector.extract_strided_slice %6 {offsets = [4, 0], sizes = [4, 32], strides = [1, 1]} : vector<24x32xf32> to vector<4x32xf32>
    %18 = vector.extract_strided_slice %17 {offsets = [0, 0], sizes = [4, 30], strides = [1, 1]} : vector<4x32xf32> to vector<4x30xf32>
    %19 = vector.extract_strided_slice %17 {offsets = [0, 1], sizes = [4, 30], strides = [1, 1]} : vector<4x32xf32> to vector<4x30xf32>
    %20 = vector.extract_strided_slice %17 {offsets = [0, 2], sizes = [4, 30], strides = [1, 1]} : vector<4x32xf32> to vector<4x30xf32>
    %21 = tpu.concatenate %10, %11, %12, %14, %15, %16, %18, %19, %20 in 0 : vector<4x30xf32>, vector<4x30xf32>, vector<4x30xf32>, vector<4x30xf32>, vector<4x30xf32>, vector<4x30xf32>, vector<4x30xf32>, vector<4x30xf32>, vector<4x30xf32> -> vector<36x30xf32>
    %cst_7 = arith.constant dense<0.000000e+00> : vector<8x30xf32>
    %22 = tpu.matmul %7, %21, %cst_7 {dimension_numbers = #tpu.dot_dimension_numbers<[1], [0], [0], [1], [0, 0, 1, 1], [], []>} : vector<8x36xf32>, vector<36x30xf32>, vector<8x30xf32> -> vector<8x30xf32>
    %23 = vector.broadcast %8 : vector<8x1xf32> to vector<8x30xf32>
    %24 = arith.addf %22, %23 : vector<8x30xf32>
    %c0_8 = arith.constant 0 : index
    %c0_9 = arith.constant 0 : index
    %c0_10 = arith.constant 0 : index
    %c0_11 = arith.constant 0 : index
    %c0_12 = arith.constant 0 : index
    %25 = vector.load %arg6[%c0_8, %c0_9, %c0_10, %c0_11, %c0_12] : memref<1x8x1x10x30xf32, #tpu.memory_space<vmem>>, vector<1x8x1x1x30xf32>
    %26 = vector.shape_cast %25 : vector<1x8x1x1x30xf32> to vector<8x30xf32>
    %27 = vector.shape_cast %24 : vector<8x30xf32> to vector<1x8x1x1x30xf32>
    tpu.vector_store %arg6[%c0_8, %c0_9, %c0_10, %c0_11, %c0_12], %27 {strides = array<i32>} : memref<1x8x1x10x30xf32, #tpu.memory_space<vmem>>, vector<1x8x1x1x30xf32>,
    %28 = vector.extract_strided_slice %6 {offsets = [0, 0], sizes = [4, 32], strides = [1, 1]} : vector<24x32xf32> to vector<4x32xf32>
    %29 = vector.extract_strided_slice %28 {offsets = [0, 0], sizes = [4, 30], strides = [1, 1]} : vector<4x32xf32> to vector<4x30xf32>
    %30 = vector.extract_strided_slice %28 {offsets = [0, 1], sizes = [4, 30], strides = [1, 1]} : vector<4x32xf32> to vector<4x30xf32>
    %31 = vector.extract_strided_slice %28 {offsets = [0, 2], sizes = [4, 30], strides = [1, 1]} : vector<4x32xf32> to vector<4x30xf32>
    %32 = vector.extract_strided_slice %6 {offsets = [4, 0], sizes = [4, 32], strides = [1, 1]} : vector<24x32xf32> to vector<4x32xf32>
    %33 = vector.extract_strided_slice %32 {offsets = [0, 0], sizes = [4, 30], strides = [1, 1]} : vector<4x32xf32> to vector<4x30xf32>
    %34 = vector.extract_strided_slice %32 {offsets = [0, 1], sizes = [4, 30], strides = [1, 1]} : vector<4x32xf32> to vector<4x30xf32>
    %35 = vector.extract_strided_slice %32 {offsets = [0, 2], sizes = [4, 30], strides = [1, 1]} : vector<4x32xf32> to vector<4x30xf32>
    %36 = vector.extract_strided_slice %6 {offsets = [4, 0], sizes = [4, 32], strides = [1, 1]} : vector<24x32xf32> to vector<4x32xf32>
    %37 = vector.extract_strided_slice %36 {offsets = [0, 0], sizes = [4, 30], strides = [1, 1]} : vector<4x32xf32> to vector<4x30xf32>
    %38 = vector.extract_strided_slice %36 {offsets = [0, 1], sizes = [4, 30], strides = [1, 1]} : vector<4x32xf32> to vector<4x30xf32>
    %39 = vector.extract_strided_slice %36 {offsets = [0, 2], sizes = [4, 30], strides = [1, 1]} : vector<4x32xf32> to vector<4x30xf32>
    %40 = tpu.concatenate %29, %30, %31, %33, %34, %35, %37, %38, %39 in 0 : vector<4x30xf32>, vector<4x30xf32>, vector<4x30xf32>, vector<4x30xf32>, vector<4x30xf32>, vector<4x30xf32>, vector<4x30xf32>, vector<4x30xf32>, vector<4x30xf32> -> vector<36x30xf32>
    %cst_13 = arith.constant dense<0.000000e+00> : vector<8x30xf32>
    %41 = tpu.matmul %7, %40, %cst_13 {dimension_numbers = #tpu.dot_dimension_numbers<[1], [0], [0], [1], [0, 0, 1, 1], [], []>} : vector<8x36xf32>, vector<36x30xf32>, vector<8x30xf32> -> vector<8x30xf32>
    %42 = vector.broadcast %8 : vector<8x1xf32> to vector<8x30xf32>
    %43 = arith.addf %41, %42 : vector<8x30xf32>
    %c0_14 = arith.constant 0 : index
    %c0_15 = arith.constant 0 : index
    %c0_16 = arith.constant 0 : index
    %c1 = arith.constant 1 : index
    %c0_17 = arith.constant 0 : index
    %44 = vector.load %arg6[%c0_14, %c0_15, %c0_16, %c1, %c0_17] : memref<1x8x1x10x30xf32, #tpu.memory_space<vmem>>, vector<1x8x1x1x30xf32>
    %45 = vector.shape_cast %44 : vector<1x8x1x1x30xf32> to vector<8x30xf32>
    %46 = vector.shape_cast %43 : vector<8x30xf32> to vector<1x8x1x1x30xf32>
    tpu.vector_store %arg6[%c0_14, %c0_15, %c0_16, %c1, %c0_17], %46 {strides = array<i32>} : memref<1x8x1x10x30xf32, #tpu.memory_space<vmem>>, vector<1x8x1x1x30xf32>,
    %47 = vector.extract_strided_slice %6 {offsets = [4, 0], sizes = [4, 32], strides = [1, 1]} : vector<24x32xf32> to vector<4x32xf32>
    %48 = vector.extract_strided_slice %47 {offsets = [0, 0], sizes = [4, 30], strides = [1, 1]} : vector<4x32xf32> to vector<4x30xf32>
    %49 = vector.extract_strided_slice %47 {offsets = [0, 1], sizes = [4, 30], strides = [1, 1]} : vector<4x32xf32> to vector<4x30xf32>
    %50 = vector.extract_strided_slice %47 {offsets = [0, 2], sizes = [4, 30], strides = [1, 1]} : vector<4x32xf32> to vector<4x30xf32>
    %51 = vector.extract_strided_slice %6 {offsets = [4, 0], sizes = [4, 32], strides = [1, 1]} : vector<24x32xf32> to vector<4x32xf32>
    %52 = vector.extract_strided_slice %51 {offsets = [0, 0], sizes = [4, 30], strides = [1, 1]} : vector<4x32xf32> to vector<4x30xf32>
    %53 = vector.extract_strided_slice %51 {offsets = [0, 1], sizes = [4, 30], strides = [1, 1]} : vector<4x32xf32> to vector<4x30xf32>
    %54 = vector.extract_strided_slice %51 {offsets = [0, 2], sizes = [4, 30], strides = [1, 1]} : vector<4x32xf32> to vector<4x30xf32>
    %55 = vector.extract_strided_slice %6 {offsets = [8, 0], sizes = [4, 32], strides = [1, 1]} : vector<24x32xf32> to vector<4x32xf32>
    %56 = vector.extract_strided_slice %55 {offsets = [0, 0], sizes = [4, 30], strides = [1, 1]} : vector<4x32xf32> to vector<4x30xf32>
    %57 = vector.extract_strided_slice %55 {offsets = [0, 1], sizes = [4, 30], strides = [1, 1]} : vector<4x32xf32> to vector<4x30xf32>
    %58 = vector.extract_strided_slice %55 {offsets = [0, 2], sizes = [4, 30], strides = [1, 1]} : vector<4x32xf32> to vector<4x30xf32>
    %59 = tpu.concatenate %48, %49, %50, %52, %53, %54, %56, %57, %58 in 0 : vector<4x30xf32>, vector<4x30xf32>, vector<4x30xf32>, vector<4x30xf32>, vector<4x30xf32>, vector<4x30xf32>, vector<4x30xf32>, vector<4x30xf32>, vector<4x30xf32> -> vector<36x30xf32>
    %cst_18 = arith.constant dense<0.000000e+00> : vector<8x30xf32>
    %60 = tpu.matmul %7, %59, %cst_18 {dimension_numbers = #tpu.dot_dimension_numbers<[1], [0], [0], [1], [0, 0, 1, 1], [], []>} : vector<8x36xf32>, vector<36x30xf32>, vector<8x30xf32> -> vector<8x30xf32>
    %61 = vector.broadcast %8 : vector<8x1xf32> to vector<8x30xf32>
    %62 = arith.addf %60, %61 : vector<8x30xf32>
    %c0_19 = arith.constant 0 : index
    %c0_20 = arith.constant 0 : index
    %c0_21 = arith.constant 0 : index
    %c2 = arith.constant 2 : index
    %c0_22 = arith.constant 0 : index
    %63 = vector.load %arg6[%c0_19, %c0_20, %c0_21, %c2, %c0_22] : memref<1x8x1x10x30xf32, #tpu.memory_space<vmem>>, vector<1x8x1x1x30xf32>
    %64 = vector.shape_cast %63 : vector<1x8x1x1x30xf32> to vector<8x30xf32>
    %65 = vector.shape_cast %62 : vector<8x30xf32> to vector<1x8x1x1x30xf32>
    tpu.vector_store %arg6[%c0_19, %c0_20, %c0_21, %c2, %c0_22], %65 {strides = array<i32>} : memref<1x8x1x10x30xf32, #tpu.memory_space<vmem>>, vector<1x8x1x1x30xf32>,
    %66 = vector.extract_strided_slice %6 {offsets = [4, 0], sizes = [4, 32], strides = [1, 1]} : vector<24x32xf32> to vector<4x32xf32>
    %67 = vector.extract_strided_slice %66 {offsets = [0, 0], sizes = [4, 30], strides = [1, 1]} : vector<4x32xf32> to vector<4x30xf32>
    %68 = vector.extract_strided_slice %66 {offsets = [0, 1], sizes = [4, 30], strides = [1, 1]} : vector<4x32xf32> to vector<4x30xf32>
    %69 = vector.extract_strided_slice %66 {offsets = [0, 2], sizes = [4, 30], strides = [1, 1]} : vector<4x32xf32> to vector<4x30xf32>
    %70 = vector.extract_strided_slice %6 {offsets = [8, 0], sizes = [4, 32], strides = [1, 1]} : vector<24x32xf32> to vector<4x32xf32>
    %71 = vector.extract_strided_slice %70 {offsets = [0, 0], sizes = [4, 30], strides = [1, 1]} : vector<4x32xf32> to vector<4x30xf32>
    %72 = vector.extract_strided_slice %70 {offsets = [0, 1], sizes = [4, 30], strides = [1, 1]} : vector<4x32xf32> to vector<4x30xf32>
    %73 = vector.extract_strided_slice %70 {offsets = [0, 2], sizes = [4, 30], strides = [1, 1]} : vector<4x32xf32> to vector<4x30xf32>
    %74 = vector.extract_strided_slice %6 {offsets = [8, 0], sizes = [4, 32], strides = [1, 1]} : vector<24x32xf32> to vector<4x32xf32>
    %75 = vector.extract_strided_slice %74 {offsets = [0, 0], sizes = [4, 30], strides = [1, 1]} : vector<4x32xf32> to vector<4x30xf32>
    %76 = vector.extract_strided_slice %74 {offsets = [0, 1], sizes = [4, 30], strides = [1, 1]} : vector<4x32xf32> to vector<4x30xf32>
    %77 = vector.extract_strided_slice %74 {offsets = [0, 2], sizes = [4, 30], strides = [1, 1]} : vector<4x32xf32> to vector<4x30xf32>
    %78 = tpu.concatenate %67, %68, %69, %71, %72, %73, %75, %76, %77 in 0 : vector<4x30xf32>, vector<4x30xf32>, vector<4x30xf32>, vector<4x30xf32>, vector<4x30xf32>, vector<4x30xf32>, vector<4x30xf32>, vector<4x30xf32>, vector<4x30xf32> -> vector<36x30xf32>
    %cst_23 = arith.constant dense<0.000000e+00> : vector<8x30xf32>
    %79 = tpu.matmul %7, %78, %cst_23 {dimension_numbers = #tpu.dot_dimension_numbers<[1], [0], [0], [1], [0, 0, 1, 1], [], []>} : vector<8x36xf32>, vector<36x30xf32>, vector<8x30xf32> -> vector<8x30xf32>
    %80 = vector.broadcast %8 : vector<8x1xf32> to vector<8x30xf32>
    %81 = arith.addf %79, %80 : vector<8x30xf32>
    %c0_24 = arith.constant 0 : index
    %c0_25 = arith.constant 0 : index
    %c0_26 = arith.constant 0 : index
    %c3 = arith.constant 3 : index
    %c0_27 = arith.constant 0 : index
    %82 = vector.load %arg6[%c0_24, %c0_25, %c0_26, %c3, %c0_27] : memref<1x8x1x10x30xf32, #tpu.memory_space<vmem>>, vector<1x8x1x1x30xf32>
    %83 = vector.shape_cast %82 : vector<1x8x1x1x30xf32> to vector<8x30xf32>
    %84 = vector.shape_cast %81 : vector<8x30xf32> to vector<1x8x1x1x30xf32>
    tpu.vector_store %arg6[%c0_24, %c0_25, %c0_26, %c3, %c0_27], %84 {strides = array<i32>} : memref<1x8x1x10x30xf32, #tpu.memory_space<vmem>>, vector<1x8x1x1x30xf32>,
    %85 = vector.extract_strided_slice %6 {offsets = [8, 0], sizes = [4, 32], strides = [1, 1]} : vector<24x32xf32> to vector<4x32xf32>
    %86 = vector.extract_strided_slice %85 {offsets = [0, 0], sizes = [4, 30], strides = [1, 1]} : vector<4x32xf32> to vector<4x30xf32>
    %87 = vector.extract_strided_slice %85 {offsets = [0, 1], sizes = [4, 30], strides = [1, 1]} : vector<4x32xf32> to vector<4x30xf32>
    %88 = vector.extract_strided_slice %85 {offsets = [0, 2], sizes = [4, 30], strides = [1, 1]} : vector<4x32xf32> to vector<4x30xf32>
    %89 = vector.extract_strided_slice %6 {offsets = [8, 0], sizes = [4, 32], strides = [1, 1]} : vector<24x32xf32> to vector<4x32xf32>
    %90 = vector.extract_strided_slice %89 {offsets = [0, 0], sizes = [4, 30], strides = [1, 1]} : vector<4x32xf32> to vector<4x30xf32>
    %91 = vector.extract_strided_slice %89 {offsets = [0, 1], sizes = [4, 30], strides = [1, 1]} : vector<4x32xf32> to vector<4x30xf32>
    %92 = vector.extract_strided_slice %89 {offsets = [0, 2], sizes = [4, 30], strides = [1, 1]} : vector<4x32xf32> to vector<4x30xf32>
    %93 = vector.extract_strided_slice %6 {offsets = [12, 0], sizes = [4, 32], strides = [1, 1]} : vector<24x32xf32> to vector<4x32xf32>
    %94 = vector.extract_strided_slice %93 {offsets = [0, 0], sizes = [4, 30], strides = [1, 1]} : vector<4x32xf32> to vector<4x30xf32>
    %95 = vector.extract_strided_slice %93 {offsets = [0, 1], sizes = [4, 30], strides = [1, 1]} : vector<4x32xf32> to vector<4x30xf32>
    %96 = vector.extract_strided_slice %93 {offsets = [0, 2], sizes = [4, 30], strides = [1, 1]} : vector<4x32xf32> to vector<4x30xf32>
    %97 = tpu.concatenate %86, %87, %88, %90, %91, %92, %94, %95, %96 in 0 : vector<4x30xf32>, vector<4x30xf32>, vector<4x30xf32>, vector<4x30xf32>, vector<4x30xf32>, vector<4x30xf32>, vector<4x30xf32>, vector<4x30xf32>, vector<4x30xf32> -> vector<36x30xf32>
    %cst_28 = arith.constant dense<0.000000e+00> : vector<8x30xf32>
    %98 = tpu.matmul %7, %97, %cst_28 {dimension_numbers = #tpu.dot_dimension_numbers<[1], [0], [0], [1], [0, 0, 1, 1], [], []>} : vector<8x36xf32>, vector<36x30xf32>, vector<8x30xf32> -> vector<8x30xf32>
    %99 = vector.broadcast %8 : vector<8x1xf32> to vector<8x30xf32>
    %100 = arith.addf %98, %99 : vector<8x30xf32>
    %c0_29 = arith.constant 0 : index
    %c0_30 = arith.constant 0 : index
    %c0_31 = arith.constant 0 : index
    %c4 = arith.constant 4 : index
    %c0_32 = arith.constant 0 : index
    %101 = vector.load %arg6[%c0_29, %c0_30, %c0_31, %c4, %c0_32] : memref<1x8x1x10x30xf32, #tpu.memory_space<vmem>>, vector<1x8x1x1x30xf32>
    %102 = vector.shape_cast %101 : vector<1x8x1x1x30xf32> to vector<8x30xf32>
    %103 = vector.shape_cast %100 : vector<8x30xf32> to vector<1x8x1x1x30xf32>
    tpu.vector_store %arg6[%c0_29, %c0_30, %c0_31, %c4, %c0_32], %103 {strides = array<i32>} : memref<1x8x1x10x30xf32, #tpu.memory_space<vmem>>, vector<1x8x1x1x30xf32>,
    %104 = vector.extract_strided_slice %6 {offsets = [8, 0], sizes = [4, 32], strides = [1, 1]} : vector<24x32xf32> to vector<4x32xf32>
    %105 = vector.extract_strided_slice %104 {offsets = [0, 0], sizes = [4, 30], strides = [1, 1]} : vector<4x32xf32> to vector<4x30xf32>
    %106 = vector.extract_strided_slice %104 {offsets = [0, 1], sizes = [4, 30], strides = [1, 1]} : vector<4x32xf32> to vector<4x30xf32>
    %107 = vector.extract_strided_slice %104 {offsets = [0, 2], sizes = [4, 30], strides = [1, 1]} : vector<4x32xf32> to vector<4x30xf32>
    %108 = vector.extract_strided_slice %6 {offsets = [12, 0], sizes = [4, 32], strides = [1, 1]} : vector<24x32xf32> to vector<4x32xf32>
    %109 = vector.extract_strided_slice %108 {offsets = [0, 0], sizes = [4, 30], strides = [1, 1]} : vector<4x32xf32> to vector<4x30xf32>
    %110 = vector.extract_strided_slice %108 {offsets = [0, 1], sizes = [4, 30], strides = [1, 1]} : vector<4x32xf32> to vector<4x30xf32>
    %111 = vector.extract_strided_slice %108 {offsets = [0, 2], sizes = [4, 30], strides = [1, 1]} : vector<4x32xf32> to vector<4x30xf32>
    %112 = vector.extract_strided_slice %6 {offsets = [12, 0], sizes = [4, 32], strides = [1, 1]} : vector<24x32xf32> to vector<4x32xf32>
    %113 = vector.extract_strided_slice %112 {offsets = [0, 0], sizes = [4, 30], strides = [1, 1]} : vector<4x32xf32> to vector<4x30xf32>
    %114 = vector.extract_strided_slice %112 {offsets = [0, 1], sizes = [4, 30], strides = [1, 1]} : vector<4x32xf32> to vector<4x30xf32>
    %115 = vector.extract_strided_slice %112 {offsets = [0, 2], sizes = [4, 30], strides = [1, 1]} : vector<4x32xf32> to vector<4x30xf32>
    %116 = tpu.concatenate %105, %106, %107, %109, %110, %111, %113, %114, %115 in 0 : vector<4x30xf32>, vector<4x30xf32>, vector<4x30xf32>, vector<4x30xf32>, vector<4x30xf32>, vector<4x30xf32>, vector<4x30xf32>, vector<4x30xf32>, vector<4x30xf32> -> vector<36x30xf32>
    %cst_33 = arith.constant dense<0.000000e+00> : vector<8x30xf32>
    %117 = tpu.matmul %7, %116, %cst_33 {dimension_numbers = #tpu.dot_dimension_numbers<[1], [0], [0], [1], [0, 0, 1, 1], [], []>} : vector<8x36xf32>, vector<36x30xf32>, vector<8x30xf32> -> vector<8x30xf32>
    %118 = vector.broadcast %8 : vector<8x1xf32> to vector<8x30xf32>
    %119 = arith.addf %117, %118 : vector<8x30xf32>
    %c0_34 = arith.constant 0 : index
    %c0_35 = arith.constant 0 : index
    %c0_36 = arith.constant 0 : index
    %c5 = arith.constant 5 : index
    %c0_37 = arith.constant 0 : index
    %120 = vector.load %arg6[%c0_34, %c0_35, %c0_36, %c5, %c0_37] : memref<1x8x1x10x30xf32, #tpu.memory_space<vmem>>, vector<1x8x1x1x30xf32>
    %121 = vector.shape_cast %120 : vector<1x8x1x1x30xf32> to vector<8x30xf32>
    %122 = vector.shape_cast %119 : vector<8x30xf32> to vector<1x8x1x1x30xf32>
    tpu.vector_store %arg6[%c0_34, %c0_35, %c0_36, %c5, %c0_37], %122 {strides = array<i32>} : memref<1x8x1x10x30xf32, #tpu.memory_space<vmem>>, vector<1x8x1x1x30xf32>,
    %123 = vector.extract_strided_slice %6 {offsets = [12, 0], sizes = [4, 32], strides = [1, 1]} : vector<24x32xf32> to vector<4x32xf32>
    %124 = vector.extract_strided_slice %123 {offsets = [0, 0], sizes = [4, 30], strides = [1, 1]} : vector<4x32xf32> to vector<4x30xf32>
    %125 = vector.extract_strided_slice %123 {offsets = [0, 1], sizes = [4, 30], strides = [1, 1]} : vector<4x32xf32> to vector<4x30xf32>
    %126 = vector.extract_strided_slice %123 {offsets = [0, 2], sizes = [4, 30], strides = [1, 1]} : vector<4x32xf32> to vector<4x30xf32>
    %127 = vector.extract_strided_slice %6 {offsets = [12, 0], sizes = [4, 32], strides = [1, 1]} : vector<24x32xf32> to vector<4x32xf32>
    %128 = vector.extract_strided_slice %127 {offsets = [0, 0], sizes = [4, 30], strides = [1, 1]} : vector<4x32xf32> to vector<4x30xf32>
    %129 = vector.extract_strided_slice %127 {offsets = [0, 1], sizes = [4, 30], strides = [1, 1]} : vector<4x32xf32> to vector<4x30xf32>
    %130 = vector.extract_strided_slice %127 {offsets = [0, 2], sizes = [4, 30], strides = [1, 1]} : vector<4x32xf32> to vector<4x30xf32>
    %131 = vector.extract_strided_slice %6 {offsets = [16, 0], sizes = [4, 32], strides = [1, 1]} : vector<24x32xf32> to vector<4x32xf32>
    %132 = vector.extract_strided_slice %131 {offsets = [0, 0], sizes = [4, 30], strides = [1, 1]} : vector<4x32xf32> to vector<4x30xf32>
    %133 = vector.extract_strided_slice %131 {offsets = [0, 1], sizes = [4, 30], strides = [1, 1]} : vector<4x32xf32> to vector<4x30xf32>
    %134 = vector.extract_strided_slice %131 {offsets = [0, 2], sizes = [4, 30], strides = [1, 1]} : vector<4x32xf32> to vector<4x30xf32>
    %135 = tpu.concatenate %124, %125, %126, %128, %129, %130, %132, %133, %134 in 0 : vector<4x30xf32>, vector<4x30xf32>, vector<4x30xf32>, vector<4x30xf32>, vector<4x30xf32>, vector<4x30xf32>, vector<4x30xf32>, vector<4x30xf32>, vector<4x30xf32> -> vector<36x30xf32>
    %cst_38 = arith.constant dense<0.000000e+00> : vector<8x30xf32>
    %136 = tpu.matmul %7, %135, %cst_38 {dimension_numbers = #tpu.dot_dimension_numbers<[1], [0], [0], [1], [0, 0, 1, 1], [], []>} : vector<8x36xf32>, vector<36x30xf32>, vector<8x30xf32> -> vector<8x30xf32>
    %137 = vector.broadcast %8 : vector<8x1xf32> to vector<8x30xf32>
    %138 = arith.addf %136, %137 : vector<8x30xf32>
    %c0_39 = arith.constant 0 : index
    %c0_40 = arith.constant 0 : index
    %c0_41 = arith.constant 0 : index
    %c6 = arith.constant 6 : index
    %c0_42 = arith.constant 0 : index
    %139 = vector.load %arg6[%c0_39, %c0_40, %c0_41, %c6, %c0_42] : memref<1x8x1x10x30xf32, #tpu.memory_space<vmem>>, vector<1x8x1x1x30xf32>
    %140 = vector.shape_cast %139 : vector<1x8x1x1x30xf32> to vector<8x30xf32>
    %141 = vector.shape_cast %138 : vector<8x30xf32> to vector<1x8x1x1x30xf32>
    tpu.vector_store %arg6[%c0_39, %c0_40, %c0_41, %c6, %c0_42], %141 {strides = array<i32>} : memref<1x8x1x10x30xf32, #tpu.memory_space<vmem>>, vector<1x8x1x1x30xf32>,
    %142 = vector.extract_strided_slice %6 {offsets = [12, 0], sizes = [4, 32], strides = [1, 1]} : vector<24x32xf32> to vector<4x32xf32>
    %143 = vector.extract_strided_slice %142 {offsets = [0, 0], sizes = [4, 30], strides = [1, 1]} : vector<4x32xf32> to vector<4x30xf32>
    %144 = vector.extract_strided_slice %142 {offsets = [0, 1], sizes = [4, 30], strides = [1, 1]} : vector<4x32xf32> to vector<4x30xf32>
    %145 = vector.extract_strided_slice %142 {offsets = [0, 2], sizes = [4, 30], strides = [1, 1]} : vector<4x32xf32> to vector<4x30xf32>
    %146 = vector.extract_strided_slice %6 {offsets = [16, 0], sizes = [4, 32], strides = [1, 1]} : vector<24x32xf32> to vector<4x32xf32>
    %147 = vector.extract_strided_slice %146 {offsets = [0, 0], sizes = [4, 30], strides = [1, 1]} : vector<4x32xf32> to vector<4x30xf32>
    %148 = vector.extract_strided_slice %146 {offsets = [0, 1], sizes = [4, 30], strides = [1, 1]} : vector<4x32xf32> to vector<4x30xf32>
    %149 = vector.extract_strided_slice %146 {offsets = [0, 2], sizes = [4, 30], strides = [1, 1]} : vector<4x32xf32> to vector<4x30xf32>
    %150 = vector.extract_strided_slice %6 {offsets = [16, 0], sizes = [4, 32], strides = [1, 1]} : vector<24x32xf32> to vector<4x32xf32>
    %151 = vector.extract_strided_slice %150 {offsets = [0, 0], sizes = [4, 30], strides = [1, 1]} : vector<4x32xf32> to vector<4x30xf32>
    %152 = vector.extract_strided_slice %150 {offsets = [0, 1], sizes = [4, 30], strides = [1, 1]} : vector<4x32xf32> to vector<4x30xf32>
    %153 = vector.extract_strided_slice %150 {offsets = [0, 2], sizes = [4, 30], strides = [1, 1]} : vector<4x32xf32> to vector<4x30xf32>
    %154 = tpu.concatenate %143, %144, %145, %147, %148, %149, %151, %152, %153 in 0 : vector<4x30xf32>, vector<4x30xf32>, vector<4x30xf32>, vector<4x30xf32>, vector<4x30xf32>, vector<4x30xf32>, vector<4x30xf32>, vector<4x30xf32>, vector<4x30xf32> -> vector<36x30xf32>
    %cst_43 = arith.constant dense<0.000000e+00> : vector<8x30xf32>
    %155 = tpu.matmul %7, %154, %cst_43 {dimension_numbers = #tpu.dot_dimension_numbers<[1], [0], [0], [1], [0, 0, 1, 1], [], []>} : vector<8x36xf32>, vector<36x30xf32>, vector<8x30xf32> -> vector<8x30xf32>
    %156 = vector.broadcast %8 : vector<8x1xf32> to vector<8x30xf32>
    %157 = arith.addf %155, %156 : vector<8x30xf32>
    %c0_44 = arith.constant 0 : index
    %c0_45 = arith.constant 0 : index
    %c0_46 = arith.constant 0 : index
    %c7 = arith.constant 7 : index
    %c0_47 = arith.constant 0 : index
    %158 = vector.load %arg6[%c0_44, %c0_45, %c0_46, %c7, %c0_47] : memref<1x8x1x10x30xf32, #tpu.memory_space<vmem>>, vector<1x8x1x1x30xf32>
    %159 = vector.shape_cast %158 : vector<1x8x1x1x30xf32> to vector<8x30xf32>
    %160 = vector.shape_cast %157 : vector<8x30xf32> to vector<1x8x1x1x30xf32>
    tpu.vector_store %arg6[%c0_44, %c0_45, %c0_46, %c7, %c0_47], %160 {strides = array<i32>} : memref<1x8x1x10x30xf32, #tpu.memory_space<vmem>>, vector<1x8x1x1x30xf32>,
    %161 = vector.extract_strided_slice %6 {offsets = [16, 0], sizes = [4, 32], strides = [1, 1]} : vector<24x32xf32> to vector<4x32xf32>
    %162 = vector.extract_strided_slice %161 {offsets = [0, 0], sizes = [4, 30], strides = [1, 1]} : vector<4x32xf32> to vector<4x30xf32>
    %163 = vector.extract_strided_slice %161 {offsets = [0, 1], sizes = [4, 30], strides = [1, 1]} : vector<4x32xf32> to vector<4x30xf32>
    %164 = vector.extract_strided_slice %161 {offsets = [0, 2], sizes = [4, 30], strides = [1, 1]} : vector<4x32xf32> to vector<4x30xf32>
    %165 = vector.extract_strided_slice %6 {offsets = [16, 0], sizes = [4, 32], strides = [1, 1]} : vector<24x32xf32> to vector<4x32xf32>
    %166 = vector.extract_strided_slice %165 {offsets = [0, 0], sizes = [4, 30], strides = [1, 1]} : vector<4x32xf32> to vector<4x30xf32>
    %167 = vector.extract_strided_slice %165 {offsets = [0, 1], sizes = [4, 30], strides = [1, 1]} : vector<4x32xf32> to vector<4x30xf32>
    %168 = vector.extract_strided_slice %165 {offsets = [0, 2], sizes = [4, 30], strides = [1, 1]} : vector<4x32xf32> to vector<4x30xf32>
    %169 = vector.extract_strided_slice %6 {offsets = [20, 0], sizes = [4, 32], strides = [1, 1]} : vector<24x32xf32> to vector<4x32xf32>
    %170 = vector.extract_strided_slice %169 {offsets = [0, 0], sizes = [4, 30], strides = [1, 1]} : vector<4x32xf32> to vector<4x30xf32>
    %171 = vector.extract_strided_slice %169 {offsets = [0, 1], sizes = [4, 30], strides = [1, 1]} : vector<4x32xf32> to vector<4x30xf32>
    %172 = vector.extract_strided_slice %169 {offsets = [0, 2], sizes = [4, 30], strides = [1, 1]} : vector<4x32xf32> to vector<4x30xf32>
    %173 = tpu.concatenate %162, %163, %164, %166, %167, %168, %170, %171, %172 in 0 : vector<4x30xf32>, vector<4x30xf32>, vector<4x30xf32>, vector<4x30xf32>, vector<4x30xf32>, vector<4x30xf32>, vector<4x30xf32>, vector<4x30xf32>, vector<4x30xf32> -> vector<36x30xf32>
    %cst_48 = arith.constant dense<0.000000e+00> : vector<8x30xf32>
    %174 = tpu.matmul %7, %173, %cst_48 {dimension_numbers = #tpu.dot_dimension_numbers<[1], [0], [0], [1], [0, 0, 1, 1], [], []>} : vector<8x36xf32>, vector<36x30xf32>, vector<8x30xf32> -> vector<8x30xf32>
    %175 = vector.broadcast %8 : vector<8x1xf32> to vector<8x30xf32>
    %176 = arith.addf %174, %175 : vector<8x30xf32>
    %c0_49 = arith.constant 0 : index
    %c0_50 = arith.constant 0 : index
    %c0_51 = arith.constant 0 : index
    %c8 = arith.constant 8 : index
    %c0_52 = arith.constant 0 : index
    %177 = vector.load %arg6[%c0_49, %c0_50, %c0_51, %c8, %c0_52] : memref<1x8x1x10x30xf32, #tpu.memory_space<vmem>>, vector<1x8x1x1x30xf32>
    %178 = vector.shape_cast %177 : vector<1x8x1x1x30xf32> to vector<8x30xf32>
    %179 = vector.shape_cast %176 : vector<8x30xf32> to vector<1x8x1x1x30xf32>
    tpu.vector_store %arg6[%c0_49, %c0_50, %c0_51, %c8, %c0_52], %179 {strides = array<i32>} : memref<1x8x1x10x30xf32, #tpu.memory_space<vmem>>, vector<1x8x1x1x30xf32>,
    %180 = vector.extract_strided_slice %6 {offsets = [16, 0], sizes = [4, 32], strides = [1, 1]} : vector<24x32xf32> to vector<4x32xf32>
    %181 = vector.extract_strided_slice %180 {offsets = [0, 0], sizes = [4, 30], strides = [1, 1]} : vector<4x32xf32> to vector<4x30xf32>
    %182 = vector.extract_strided_slice %180 {offsets = [0, 1], sizes = [4, 30], strides = [1, 1]} : vector<4x32xf32> to vector<4x30xf32>
    %183 = vector.extract_strided_slice %180 {offsets = [0, 2], sizes = [4, 30], strides = [1, 1]} : vector<4x32xf32> to vector<4x30xf32>
    %184 = vector.extract_strided_slice %6 {offsets = [20, 0], sizes = [4, 32], strides = [1, 1]} : vector<24x32xf32> to vector<4x32xf32>
    %185 = vector.extract_strided_slice %184 {offsets = [0, 0], sizes = [4, 30], strides = [1, 1]} : vector<4x32xf32> to vector<4x30xf32>
    %186 = vector.extract_strided_slice %184 {offsets = [0, 1], sizes = [4, 30], strides = [1, 1]} : vector<4x32xf32> to vector<4x30xf32>
    %187 = vector.extract_strided_slice %184 {offsets = [0, 2], sizes = [4, 30], strides = [1, 1]} : vector<4x32xf32> to vector<4x30xf32>
    %188 = vector.extract_strided_slice %6 {offsets = [20, 0], sizes = [4, 32], strides = [1, 1]} : vector<24x32xf32> to vector<4x32xf32>
    %189 = vector.extract_strided_slice %188 {offsets = [0, 0], sizes = [4, 30], strides = [1, 1]} : vector<4x32xf32> to vector<4x30xf32>
    %190 = vector.extract_strided_slice %188 {offsets = [0, 1], sizes = [4, 30], strides = [1, 1]} : vector<4x32xf32> to vector<4x30xf32>
    %191 = vector.extract_strided_slice %188 {offsets = [0, 2], sizes = [4, 30], strides = [1, 1]} : vector<4x32xf32> to vector<4x30xf32>
    %192 = tpu.concatenate %181, %182, %183, %185, %186, %187, %189, %190, %191 in 0 : vector<4x30xf32>, vector<4x30xf32>, vector<4x30xf32>, vector<4x30xf32>, vector<4x30xf32>, vector<4x30xf32>, vector<4x30xf32>, vector<4x30xf32>, vector<4x30xf32> -> vector<36x30xf32>
    %cst_53 = arith.constant dense<0.000000e+00> : vector<8x30xf32>
    %193 = tpu.matmul %7, %192, %cst_53 {dimension_numbers = #tpu.dot_dimension_numbers<[1], [0], [0], [1], [0, 0, 1, 1], [], []>} : vector<8x36xf32>, vector<36x30xf32>, vector<8x30xf32> -> vector<8x30xf32>
    %194 = vector.broadcast %8 : vector<8x1xf32> to vector<8x30xf32>
    %195 = arith.addf %193, %194 : vector<8x30xf32>
    %c0_54 = arith.constant 0 : index
    %c0_55 = arith.constant 0 : index
    %c0_56 = arith.constant 0 : index
    %c9 = arith.constant 9 : index
    %c0_57 = arith.constant 0 : index
    %196 = vector.load %arg6[%c0_54, %c0_55, %c0_56, %c9, %c0_57] : memref<1x8x1x10x30xf32, #tpu.memory_space<vmem>>, vector<1x8x1x1x30xf32>
    %197 = vector.shape_cast %196 : vector<1x8x1x1x30xf32> to vector<8x30xf32>
    %198 = vector.shape_cast %195 : vector<8x30xf32> to vector<1x8x1x1x30xf32>
    tpu.vector_store %arg6[%c0_54, %c0_55, %c0_56, %c9, %c0_57], %198 {strides = array<i32>} : memref<1x8x1x10x30xf32, #tpu.memory_space<vmem>>, vector<1x8x1x1x30xf32>,
    return
  }
  func.func @transform_0(%arg0: i32, %arg1: i32) -> (i32, i32, i32) {
    %c0_i32 = arith.constant 0 : i32
    %c0_i32_0 = arith.constant 0 : i32
    %c0_i32_1 = arith.constant 0 : i32
    return %arg0, %c0_i32, %c0_i32_0 : i32, i32, i32
  }
  func.func @transform_1(%arg0: i32, %arg1: i32) -> (i32, i32) {
    %c0_i32 = arith.constant 0 : i32
    %c0_i32_0 = arith.constant 0 : i32
    %c0_i32_1 = arith.constant 0 : i32
    return %c0_i32, %c0_i32_0 : i32, i32
  }
  func.func @transform_2(%arg0: i32, %arg1: i32) -> (i32, i32) {
    %c0_i32 = arith.constant 0 : i32
    %c0_i32_0 = arith.constant 0 : i32
    %c0_i32_1 = arith.constant 0 : i32
    return %c0_i32, %c0_i32_0 : i32, i32
  }
  func.func @transform_3(%arg0: i32, %arg1: i32) -> (i32, i32) {
    %c0_i32 = arith.constant 0 : i32
    %c0_i32_0 = arith.constant 0 : i32
    %c0_i32_1 = arith.constant 0 : i32
    return %c0_i32, %c0_i32_0 : i32, i32
  }
  func.func @transform_4(%arg0: i32, %arg1: i32) -> (i32, i32, i32, i32, i32) {
    %c0_i32 = arith.constant 0 : i32
    %c0_i32_0 = arith.constant 0 : i32
    %c0_i32_1 = arith.constant 0 : i32
    %c0_i32_2 = arith.constant 0 : i32
    return %arg0, %c0_i32, %arg1, %c0_i32_0, %c0_i32_1 : i32, i32, i32, i32, i32
  }
}

</mosaic_0001>

<bundles_post_ra>
// kernel: tpu_custom_call.1
= control target key start
LH: loop header
LB: loop body
LE: loop exit
PB: predicated region body
PF: predicated region fallthrough
CT: control target
= control target key end

     0   :  { %s2395_s15 = smov 0   ;;  %s2397_s16 = smov 0   ;;  %s2893_s0 = inlined_call_operand.vmem [shape: f32[2,64,16], index: 0, kind: input, shape index: {}]   ;;  %s2894_s1 = inlined_call_operand.vmem [shape: f32[16,32], index: 1, kind: input, shape index: {}]   ;;  %s2895_s2 = inlined_call_operand.vmem [shape: f32[8,36], index: 2, kind: input, shape index: {}]   ;;  %s2896_s3 = inlined_call_operand.vmem [shape: f32[8,1], index: 3, kind: input, shape index: {}]   ;;  %s2897_s4 = inlined_call_operand.vmem [shape: f32[2,8,3,10,30], index: 4, kind: output, shape index: {}]  }
   0x1   :  { %s2399_s17 = smov 0   ;;  %s2401_s18 = smov 0  }
   0x2   :  { %s2403_s19 = smov 0   ;;  %s2405_s20 = smov 0  }
   0x3   :  { %s2407_s21 = smov 0  }
   0x4 LB: > { %s23_s22 = sadd.s32 1, %s2353_s19  ;;  %s26_s23 = sadd.s32 1, %s2357_s20  ;;  %s2361_s21 = sphi %s2407_s21, %s14_s21   ;;  %s2357_s20 = sphi %s2405_s20, %s2904_s20   ;;  %s2353_s19 = sphi %s2403_s19, %s2903_s19   ;;  %s2349_s18 = sphi %s2401_s18, %s2902_s18   ;;  %s2345_s17 = sphi %s2399_s17, %s2901_s17   ;;  %s2341_s16 = sphi %s2397_s16, %s2900_s16   ;;  %s2337_s15 = sphi %s2395_s15, %s2899_s15  }
   0x5   : > { %p24_p0 = scmp.ge.s32.totalorder %s23_s22, 3  ;;  %s1924_s24 = sadd.s32 4294967295, %s2361_s21  }
   0x6   : > { %p134_p1 = scmp.ne.s32.totalorder %s2341_s16, %s2337_s15  ;;  %p135_p2 = scmp.eq.s32.totalorder %s1924_s24, 5 }
   0x7   : > { %s2906_s22 = smov (%p24_p0, %s23_s22), 0  ;;  %s2908_s23 = smov (!%p24_p0, %s26_s23), %s2357_s20 }
   0x8   : > { %s120_s25 = ssub.s32 %s2353_s19, %s2906_s22  ;;  %p28_p3 = scmp.ge.s32.totalorder %s2908_s23, 2 }
   0x9   : > { %p1928_p4 = scmp.ge.s32.totalorder %s2361_s21, 1  ;;  %p2441_p5 = por %p135_p2, %p134_p1 }
   0xa   : > { %p176_p6 = scmp.lt.s32.totalorder %s2361_s21, 7  ;;  %s2910_s23 = smov (%p28_p3, %s2908_s23), 0 }
   0xb   : > { %s119_s27 = ssub.s32 %s2357_s20, %s2910_s23  ;;  %s124_s29 = sadd.s32 1, %s2341_s16 }
   0xc   : > { %p177_p7 = pnand %p1928_p4, %p176_p6  ;;  %s121_s28 = sor.u32 %s120_s25, %s119_s27 }
   0xd   : > { %p122_p8 = scmp.eq.s32.totalorder %s121_s28, 0  ;;  %v211_v0 = vld [vmem:[%s2894_s1] sm:$0xff] (!%p177_p7)  ;;  %v212_v1 = vld [vmem:[%s2894_s1 + $0x8] sm:$0xff] (!%p177_p7)  ;;  %p201_p9 = scmp.lt.s32.totalorder (!%p177_p7), %s2349_s18, 1  ;;  %v2363_v2 = vmov (!%p177_p7), 0.0|0.0   ;;  %vm2364_vm0 = vmmov (!%p177_p7), 0  }
   0xe   : > { %180 = sbr.rel (%p177_p7) target bundleno = 651 (0x28b), region = 36  ;;  %2169 = vmatprep.subr.bf16.mxu0 (!%p177_p7), %v2363_v2  ;;  %v2170_v3 = vpack.c.bf16 (!%p177_p7), %v212_v1, %v211_v0  ;;  %v2365_v4 = vmov (!%p177_p7), 0.0   ;;  %2172 = vmatprep.subr.bf16.mxu1 (!%p177_p7), %v2363_v2  ;;  %vm213_vm1 = vcmask (!%p177_p7), 130048   ;;  %s2366_s25 = smov (!%p177_p7), 127   ;;  %v304_v19 = vld [vmem:[%s2896_s3] sm:$0xff] (!%p177_p7)  ;;  %v2368_v20 = vmov (!%p177_p7), 0  }
   0xf   : > { %s2452_s30 = scalar_select %p122_p8, %s2341_s16, %s124_s29  }
  0x10   : > { %2030 = vmatprep.mubr.msk.f32.mxu0 (!%p177_p7), %vm2364_vm0, %v2365_v4  ;;  %s206_s9 = smul.u32 (!%p177_p7), 20, %s2345_s17  ;;  %2049 = vmatprep.mubr.msk.f32.mxu1 (!%p177_p7), %vm2364_vm0, %v2365_v4  ;;  %s2367_s27 = smov (!%p177_p7), 126   ;;  %vm320_vm2 = vcmask (!%p177_p7), 1043456   ;;  %v2516_v40 = vld [vmem:[%s2895_s2] sm:$0xff] (!%p177_p7)  ;;  %vm330_vm3 = vcmask (!%p177_p7), 293888   ;;  %vm464_vm4 = vcmask (!%p177_p7), 237568  }
  0x11   : > { %2171 = vmatpush3.bf16.msra.mxu0 (!%p177_p7), %v2170_v3  ;;  %2306 = vset.pattern.permute.xlu0 (!%p177_p7), %v2368_v20  ;;  %s198_s7 = sand.u32 (!%p177_p7), 1, %s2337_s15  }
  0x12   : > { %2178 = vmatprep.subr.bf16.mxu0 (!%p177_p7), %v2363_v2  ;;  %s1929_s8 = sshll.u32 (!%p177_p7), %s198_s7, 7 }
  0x13   : > { %s2627_s15 = scalar_lea.vmem (!%p177_p7), [#allocation2], %s1929_s8 }
  0x15   : > { %s202_s10 = scalar_select %p201_p9, %s2349_s18, 1 }
  0x17   : > { %s1960_s11 = sshll.u32 %s202_s10, 6  ;;  %s2232_s10 = smul.u32 (%p2441_p5), 48, %s2349_s18 }
  0x18   : > { %s205_s14 = scalar_lea.vmem %s2893_s0, %s1960_s11 }
  0x19   : > { %s207_s24 = scalar_lea.vmem %s205_s14, %s206_s9  ;;  %s1956_s9 = sshll.u32 (%p2441_p5), %s2345_s17, 1 }
  0x1a   : > { %v208_v5 = vld [vmem:[%s207_s24] sm:$0xff]  ;;  %v209_v6 = vld [vmem:[%s207_s24 + $0x8] sm:$0xff]  ;;  %v210_v7 = vld [vmem:[%s207_s24 + $0x10] sm:$0xff]  ;;  %s1762_s26 = sadd.s32 (%p2441_p5), %s2232_s10, %s1956_s9 }
  0x1b   : > { %2031 = vmatmul.mubr.msk.f32.vlgmr.msra.gmra.mrb[0].mxu0 %vm213_vm1, %v208_v5  ;;  %s1957_s11 = sshll.u32 (%p2441_p5), %s1762_s26, 3 }
  0x1c   : > { %2033 = vmatprep.mubr.msk.f32.mxu0 %vm2364_vm0, %v2365_v4  ;;  %s1764_s18 = scalar_lea.vmem (%p2441_p5), %s2897_s4, %s1957_s11 }
  0x1f   : > { %2034 = vmatmul.mubr.msk.f32.gmra.mrb[2].mxu0 %vm213_vm1, %v209_v6 }
  0x20   : > { %2036 = vmatprep.mubr.msk.f32.mxu0 %vm2364_vm0, %v2365_v4 }
  0x23   : > { %2037 = vmatmul.mubr.msk.f32.gmra.mrb[4].mxu0 %vm213_vm1, %v210_v7 }
  0x24   : > { %2062 = vmatprep.mubr.msk.f32.mxu0 %vm2364_vm0, %v2365_v4 }
  0xee   : > { %v289_v8 = vpop.f32.mrb[0].mxu0 }
  0xef   : > { %314 = vrot.lane.b32.xlu1 %v289_v8, %s2366_s25  ;;  %v2032_v9 = vpop.f32.mrb[1].mxu0  ;;  %v306_v10 = vrot.slane %v289_v8, 4 }
  0xf1   : > { %307 = vrot.lane.b32.xlu0 %v306_v10, %s2366_s25 }
  0xf2   : > { %v2479_v11 = vpop.f32.mrb[2].mxu0 }
  0xf3   : > { %317 = vrot.lane.b32.xlu1 %v306_v10, %s2367_s27  ;;  %v2482_v12 = vrot.slane %v2479_v11, 4  ;;  %v2035_v13 = vpop.f32.mrb[3].mxu0 }
  0xf5   : > { %310 = vrot.lane.b32.xlu0 %v289_v8, %s2367_s27  ;;  %v2296_v14 = vpack.i.bf16 %v2479_v11, %v2482_v12 }
  0xf6   : > { %v2486_v15 = vpop.f32.mrb[4].mxu0 }
  0xf7   : > { %v2489_v16 = vrot.slane %v2486_v15, 4  ;;  %762 = vrot.lane.b32.xlu1 %v2482_v12, %s2367_s27  ;;  %v2038_v17 = vpop.f32.mrb[5].mxu0 }
  0xf8   : > { %v411_v17 = vlaneseq }
  0xf9   : > { %2297 = vrot.lane.b32.xlu0 %v2296_v14, %s2366_s25  ;;  %v2301_v18 = vpack.i.bf16 %v2486_v15, %v2489_v16 }
  0xfb   : > { %2302 = vrot.lane.b32.xlu1 %v2301_v18, %s2366_s25 }
  0xfd   : > { %616 = vrot.lane.b32.xlu0 %v2479_v11, %s2367_s27 }
  0xff   : > { %1187 = vrot.lane.b32.xlu1 %v2486_v15, %s2367_s27 }
 0x101   : > { %1333 = vrot.lane.b32.xlu0 %v2489_v16, %s2367_s27 }
 0x105   : > { %327 = vperm.xlu0 %2306, %v304_v19   ;;  %v412_v19 = vshrl.u32 %v411_v17, 7 }
 0x161   : > { %v315_v21 = vpop.permute.xlu1 %314 }
 0x162   : > { %v324_v32 = vsel %vm320_vm2, %v306_v10, %v315_v21 }
 0x163   : > { %v308_v22 = vpop.permute.xlu0 %307 }
 0x164   : > { %v321_v25 = vsel %vm320_vm2, %v289_v8, %v308_v22 }
 0x165   : > { %v318_v23 = vpop.permute.xlu1 %317 }
 0x166   : > { %v323_v31 = vsel %vm320_vm2, %v315_v21, %v318_v23  ;;  %v618_v38 = vsel %vm320_vm2, %v318_v23, %v289_v8  ;;  %v765_v39 = vsel %vm320_vm2, %v318_v23, %v2482_v12 }
 0x167   : > { %v311_v24 = vpop.permute.xlu0 %310  ;;  %v2176_v34 = vpack.c.bf16 %v324_v32, %v323_v31  ;;  %v2185_v42 = vpack.c.bf16 %v618_v38, %v324_v32  ;;  %v2191_v43 = vpack.c.bf16 %v765_v39, %v324_v32 }
 0x168   : > { %v473_v26 = vsel %vm320_vm2, %v311_v24, %v289_v8  ;;  %v322_v27 = vsel %vm320_vm2, %v311_v24, %v306_v10  ;;  %v474_v30 = vsel %vm320_vm2, %v308_v22, %v311_v24 }
 0x169   : > { %v2179_v28 = vpack.c.bf16 %v473_v26, %v321_v25  ;;  %v2173_v29 = vpack.c.bf16 %v322_v27, %v321_v25  ;;  %v2182_v33 = vpack.c.bf16 %v324_v32, %v474_v30  ;;  %v763_v41 = vpop.permute.xlu1 %762 }
 0x16a   : > { %v1189_v61 = vsel %vm320_vm2, %v763_v41, %v2479_v11  ;;  %v1336_v62 = vsel %vm320_vm2, %v763_v41, %v2489_v16 }
 0x16b   : > { %2174 = vmatpush3.bf16.msra.mxu1 %v2173_v29  ;;  %2180 = vmatpush3.bf16.msra.mxu0 %v2179_v28  ;;  %v2298_v35 = vpop.permute.xlu0 %2297 }
 0x16c   : > { %2175 = vmatprep.subr.bf16.mxu1 %v2363_v2  ;;  %2181 = vmatprep.subr.bf16.mxu0 %v2363_v2  ;;  %v2300_v36 = vunpack.i.h.bf16 %v2298_v35  ;;  %v2299_v37 = vunpack.i.l.bf16 %v2298_v35 }
 0x16d   : > { %v2303_v57 = vpop.permute.xlu1 %2302 }
 0x16e   : > { %v766_v44 = vsel %vm320_vm2, %v2300_v36, %v763_v41  ;;  %v619_v45 = vsel %vm320_vm2, %v2479_v11, %v2299_v37  ;;  %v905_v53 = vsel %vm320_vm2, %v2482_v12, %v2300_v36  ;;  %v2304_v58 = vunpack.i.l.bf16 %v2303_v57 }
 0x16f   : > { %2177 = vmatpush3.bf16.msra.mxu1 %v2176_v34  ;;  %2183 = vmatpush3.bf16.msra.mxu0 %v2182_v33  ;;  %v2194_v46 = vpack.c.bf16 %v619_v45, %v766_v44  ;;  %v2188_v47 = vpack.c.bf16 %v619_v45, %v474_v30  ;;  %v617_v48 = vpop.permute.xlu0 %616  ;;  %v2200_v55 = vpack.c.bf16 %v905_v53, %v766_v44  ;;  %v2305_v60 = vunpack.i.h.bf16 %v2303_v57 }
 0x170   : > { %2047 = vmatprep.subr.mxu1 %v2365_v4  ;;  %2060 = vmatprep.subr.mxu0 %v2365_v4  ;;  %v904_v49 = vsel %vm320_vm2, %v617_v48, %v2482_v12  ;;  %v1044_v50 = vsel %vm320_vm2, %v617_v48, %v2479_v11  ;;  %v1045_v54 = vsel %vm320_vm2, %v2299_v37, %v617_v48 }
 0x171   : > { %v2197_v51 = vpack.c.bf16 %v904_v49, %v619_v45  ;;  %v2203_v52 = vpack.c.bf16 %v1044_v50, %v619_v45  ;;  %v2206_v56 = vpack.c.bf16 %v905_v53, %v1045_v54  ;;  %v2209_v63 = vpack.c.bf16 %v1189_v61, %v905_v53  ;;  %v1188_v7 = vpop.permute.xlu1 %1187 }
 0x172   : > { %v2215_v0 = vpack.c.bf16 %v1336_v62, %v905_v53  ;;  %v1190_v1 = vsel %vm320_vm2, %v2486_v15, %v2304_v58  ;;  %v1475_v8 = vsel %vm320_vm2, %v1188_v7, %v2489_v16  ;;  %v1615_v9 = vsel %vm320_vm2, %v1188_v7, %v2486_v15 }
 0x173   : > { %2048 = vmatpush3.msk.msra.mxu1 %vm320_vm2, %v318_v23  ;;  %2061 = vmatpush3.msk.msra.mxu0 %vm320_vm2, %v318_v23  ;;  %v1334_v59 = vpop.permute.xlu0 %1333  ;;  %v2212_v6 = vpack.c.bf16 %v1190_v1, %v1045_v54  ;;  %v2221_v10 = vpack.c.bf16 %v1475_v8, %v1190_v1  ;;  %v2227_v11 = vpack.c.bf16 %v1615_v9, %v1190_v1 }
 0x174   : > { %2184 = vmatprep.subr.bf16.mxu1 %v2363_v2  ;;  %2190 = vmatprep.subr.bf16.mxu0 %v2363_v2  ;;  %v1337_v3 = vsel %vm320_vm2, %v2305_v60, %v1334_v59  ;;  %v1616_v12 = vsel %vm320_vm2, %v2304_v58, %v1188_v7  ;;  %v1476_v13 = vsel %vm320_vm2, %v2489_v16, %v2305_v60 }
 0x175   : > { %2050 = vmatmul.mubr.msk.f32.vlgmr.msra.gmra.mrb[0].mxu1 %vm330_vm3, %v2516_v40  ;;  %2063 = vmatmul.mubr.msk.f32.vlgmr.msra.gmra.mrb[6].mxu0 %vm330_vm3, %v2516_v40  ;;  %v2218_v5 = vpack.c.bf16 %v1190_v1, %v1337_v3  ;;  %v2224_v14 = vpack.c.bf16 %v1476_v13, %v1337_v3  ;;  %v2230_v15 = vpack.c.bf16 %v1476_v13, %v1616_v12 }
 0x176   : > { %2186 = vmatpush3.bf16.msra.mxu1 %v2185_v42  ;;  %2192 = vmatpush3.bf16.msra.mxu0 %v2191_v43 }
 0x177   : > { %2187 = vmatprep.subr.bf16.mxu1 %v2363_v2  ;;  %2193 = vmatprep.subr.bf16.mxu0 %v2363_v2 }
 0x178   : > { %2075 = vmatprep.mubr.msk.f32.mxu1 %vm2364_vm0, %v2365_v4  ;;  %2088 = vmatprep.mubr.msk.f32.mxu0 %vm2364_vm0, %v2365_v4 }
 0x17a   : > { %2189 = vmatpush3.bf16.msra.mxu1 %v2188_v47  ;;  %2195 = vmatpush3.bf16.msra.mxu0 %v2194_v46 }
 0x17b   : > { %2073 = vmatprep.subr.mxu1 %v2365_v4  ;;  %2086 = vmatprep.subr.mxu0 %v2365_v4 }
 0x17e   : > { %2074 = vmatpush3.msk.msra.mxu1 %vm320_vm2, %v617_v48  ;;  %2087 = vmatpush3.msk.msra.mxu0 %vm320_vm2, %v617_v48 }
 0x17f   : > { %2196 = vmatprep.subr.bf16.mxu1 %v2363_v2  ;;  %2202 = vmatprep.subr.bf16.mxu0 %v2363_v2 }
 0x180   : > { %2076 = vmatmul.mubr.msk.f32.vlgmr.msra.gmra.mrb[2].mxu1 %vm330_vm3, %v2516_v40  ;;  %2089 = vmatmul.mubr.msk.f32.vlgmr.msra.gmra.mrb[8].mxu0 %vm330_vm3, %v2516_v40 }
 0x181   : > { %2198 = vmatpush3.bf16.msra.mxu1 %v2197_v51  ;;  %2204 = vmatpush3.bf16.msra.mxu0 %v2203_v52 }
 0x182   : > { %2199 = vmatprep.subr.bf16.mxu1 %v2363_v2  ;;  %2205 = vmatprep.subr.bf16.mxu0 %v2363_v2 }
 0x183   : > { %2101 = vmatprep.mubr.msk.f32.mxu1 %vm2364_vm0, %v2365_v4  ;;  %2114 = vmatprep.mubr.msk.f32.mxu0 %vm2364_vm0, %v2365_v4 }
 0x184   : > { %v2612_v20 = vpop.permute.xlu0 %327 }
 0x185   : > { %2201 = vmatpush3.bf16.msra.mxu1 %v2200_v55  ;;  %2207 = vmatpush3.bf16.msra.mxu0 %v2206_v56 }
 0x186   : > { %2099 = vmatprep.subr.mxu1 %v2365_v4  ;;  %2112 = vmatprep.subr.mxu0 %v2365_v4 }
 0x189   : > { %2100 = vmatpush3.msk.msra.mxu1 %vm320_vm2, %v763_v41  ;;  %2113 = vmatpush3.msk.msra.mxu0 %vm320_vm2, %v763_v41 }
 0x18a   : > { %2208 = vmatprep.subr.bf16.mxu1 %v2363_v2  ;;  %2214 = vmatprep.subr.bf16.mxu0 %v2363_v2 }
 0x18b   : > { %2102 = vmatmul.mubr.msk.f32.vlgmr.msra.gmra.mrb[4].mxu1 %vm330_vm3, %v2516_v40  ;;  %2115 = vmatmul.mubr.msk.f32.vlgmr.msra.gmra.mrb[10].mxu0 %vm330_vm3, %v2516_v40 }
 0x18c   : > { %2210 = vmatpush3.bf16.msra.mxu1 %v2209_v63  ;;  %2216 = vmatpush3.bf16.msra.mxu0 %v2215_v0 }
 0x18d   : > { %2211 = vmatprep.subr.bf16.mxu1 %v2363_v2  ;;  %2217 = vmatprep.subr.bf16.mxu0 %v2363_v2 }
 0x18e   : > { %2127 = vmatprep.mubr.msk.f32.mxu1 %vm2364_vm0, %v2365_v4  ;;  %2140 = vmatprep.mubr.msk.f32.mxu0 %vm2364_vm0, %v2365_v4 }
 0x190   : > { %2213 = vmatpush3.bf16.msra.mxu1 %v2212_v6  ;;  %2219 = vmatpush3.bf16.msra.mxu0 %v2218_v5 }
 0x191   : > { %2125 = vmatprep.subr.mxu1 %v2365_v4  ;;  %2138 = vmatprep.subr.mxu0 %v2365_v4 }
 0x194   : > { %2126 = vmatpush3.msk.msra.mxu1 %vm320_vm2, %v1188_v7  ;;  %2139 = vmatpush3.msk.msra.mxu0 %vm320_vm2, %v1188_v7 }
 0x195   : > { %2220 = vmatprep.subr.bf16.mxu1 %v2363_v2  ;;  %2226 = vmatprep.subr.bf16.mxu0 %v2363_v2 }
 0x196   : > { %2128 = vmatmul.mubr.msk.f32.vlgmr.msra.gmra.mrb[6].mxu1 %vm330_vm3, %v2516_v40  ;;  %2141 = vmatmul.mubr.msk.f32.vlgmr.msra.gmra.mrb[12].mxu0 %vm330_vm3, %v2516_v40 }
 0x197   : > { %2222 = vmatpush3.bf16.msra.mxu1 %v2221_v10  ;;  %2228 = vmatpush3.bf16.msra.mxu0 %v2227_v11 }
 0x198   : > { %2223 = vmatprep.subr.bf16.mxu1 %v2363_v2  ;;  %2229 = vmatprep.subr.bf16.mxu0 %v2363_v2  ;;  %v2369_v2 = vmov 1966171168  }
 0x199   : > { %2153 = vmatprep.mubr.msk.f32.mxu1 %vm2364_vm0, %v2365_v4  ;;  %2166 = vmatprep.mubr.msk.f32.mxu0 %vm2364_vm0, %v2365_v4  ;;  %v409_v16 = vunpack.c.l.s4 %v2369_v2 }
 0x19b   : > { %2225 = vmatpush3.bf16.msra.mxu1 %v2224_v14  ;;  %2231 = vmatpush3.bf16.msra.mxu0 %v2230_v15  ;;  %v410_v18 = vunpack.c.0.s8 %v409_v16 }
 0x19c   : > { %2151 = vmatprep.subr.mxu1 %v2365_v4  ;;  %2164 = vmatprep.subr.mxu0 %v2365_v4 }
 0x19d   : > { %v2615_v21 = vsub.s32 %v410_v18, %v412_v19 }
 0x19f   : > { %2152 = vmatpush3.msk.msra.mxu1 %vm320_vm2, %v1334_v59  ;;  %2165 = vmatpush3.msk.msra.mxu0 %vm320_vm2, %v1334_v59 }
 0x1a0   : > { %2154 = vmatmul.mubr.msk.f32.vlgmr.msra.gmra.mrb[8].mxu1 %vm330_vm3, %v2516_v40  ;;  %2167 = vmatmul.mubr.msk.f32.vlgmr.msra.gmra.mrb[14].mxu0 %vm330_vm3, %v2516_v40 }
 0x248   : > { %v402_v4 = vpop.f32.mrb[0].mxu1  ;;  %v541_v22 = vpop.f32.mrb[6].mxu0 }
 0x249   : > { %v2051_v23 = vpop.f32.mrb[1].mxu1  ;;  %v403_v24 = vadd.f32 %v402_v4, %v2612_v20  ;;  %v542_v25 = vadd.f32 %v541_v22, %v2612_v20  ;;  %v2064_v26 = vpop.f32.mrb[7].mxu0 }
 0x24b   : > { %v407_v27 = vcombine.high %v403_v24, %v403_v24  ;;  %v414_v28 = vrot.slane %v403_v24, %v2615_v21  ;;  %v546_v29 = vcombine.high %v542_v25, %v542_v25  ;;  %v553_v30 = vrot.slane %v542_v25, %v2615_v21 }
 0x24d   : > { %v421_v31 = vrot.slane %v407_v27, %v2615_v21  ;;  %v422_v32 = vcombine.high %v414_v28, %v414_v28  ;;  %v430_v33 = vrot.slane %v414_v28, %v2615_v21  ;;  %v560_v34 = vrot.slane %v546_v29, %v2615_v21 }
 0x24e   : > { %v561_v35 = vcombine.high %v553_v30, %v553_v30  ;;  %v569_v36 = vrot.slane %v553_v30, %v2615_v21 }
 0x24f   : > { %v423_v37 = vcombine.high %v421_v31, %v421_v31  ;;  %v437_v38 = vrot.slane %v421_v31, %v2615_v21  ;;  %v444_v39 = vrot.slane %v422_v32, %v2615_v21  ;;  %v452_v40 = vcombine.high %v430_v33, %v430_v33  ;;  %465 = vst.msk [vmem:[%s2627_s15] sm:$0x1] %vm464_vm4, %v430_v33 }
 0x250   : > { %v562_v41 = vcombine.high %v560_v34, %v560_v34  ;;  %v576_v42 = vrot.slane %v560_v34, %v2615_v21  ;;  %v583_v43 = vrot.slane %v561_v35, %v2615_v21  ;;  %v591_v44 = vcombine.high %v569_v36, %v569_v36  ;;  %603 = vst.msk [vmem:[%s2627_s15 + $0x1] sm:$0x1] %vm464_vm4, %v569_v36 }
 0x251   : > { %v451_v45 = vrot.slane %v423_v37, %v2615_v21  ;;  %v453_v46 = vcombine.high %v437_v38, %v437_v38  ;;  %v454_v47 = vcombine.high %v444_v39, %v444_v39  ;;  %466 = vst.msk [vmem:[%s2627_s15 + $0x10] sm:$0x1] %vm464_vm4, %v444_v39  ;;  %467 = vst.msk [vmem:[%s2627_s15 + $0x20] sm:$0x1] %vm464_vm4, %v452_v40 }
 0x252   : > { %469 = vst.msk [vmem:[%s2627_s15 + $0x40] sm:$0x1] %vm464_vm4, %v437_v38  ;;  %v590_v48 = vrot.slane %v562_v41, %v2615_v21  ;;  %v592_v49 = vcombine.high %v576_v42, %v576_v42  ;;  %v593_v50 = vcombine.high %v583_v43, %v583_v43  ;;  %604 = vst.msk [vmem:[%s2627_s15 + $0x11] sm:$0x1] %vm464_vm4, %v583_v43 }
 0x253   : > { %605 = vst.msk [vmem:[%s2627_s15 + $0x21] sm:$0x1] %vm464_vm4, %v591_v44  ;;  %607 = vst.msk [vmem:[%s2627_s15 + $0x41] sm:$0x1] %vm464_vm4, %v576_v42  ;;  %v455_v51 = vcombine.high %v451_v45, %v451_v45  ;;  %v688_v52 = vpop.f32.mrb[2].mxu1  ;;  %v833_v53 = vpop.f32.mrb[8].mxu0 }
 0x254   : > { %468 = vst.msk [vmem:[%s2627_s15 + $0x30] sm:$0x1] %vm464_vm4, %v454_v47  ;;  %470 = vst.msk [vmem:[%s2627_s15 + $0x50] sm:$0x1] %vm464_vm4, %v451_v45  ;;  %v594_v54 = vcombine.high %v590_v48, %v590_v48  ;;  %v689_v55 = vadd.f32 %v688_v52, %v2612_v20  ;;  %v834_v56 = vadd.f32 %v833_v53, %v2612_v20  ;;  %v2077_v57 = vpop.f32.mrb[3].mxu1  ;;  %v2090_v58 = vpop.f32.mrb[9].mxu0 }
 0x255   : > { %471 = vst.msk [vmem:[%s2627_s15 + $0x60] sm:$0x1] %vm464_vm4, %v453_v46  ;;  %606 = vst.msk [vmem:[%s2627_s15 + $0x31] sm:$0x1] %vm464_vm4, %v593_v50 }
 0x256   : > { %608 = vst.msk [vmem:[%s2627_s15 + $0x51] sm:$0x1] %vm464_vm4, %v590_v48  ;;  %609 = vst.msk [vmem:[%s2627_s15 + $0x61] sm:$0x1] %vm464_vm4, %v592_v49  ;;  %v693_v59 = vcombine.high %v689_v55, %v689_v55  ;;  %v700_v60 = vrot.slane %v689_v55, %v2615_v21  ;;  %v838_v61 = vcombine.high %v834_v56, %v834_v56 }
 0x257   : > { %472 = vst.msk [vmem:[%s2627_s15 + $0x70] sm:$0x1] %vm464_vm4, %v455_v51  ;;  %610 = vst.msk [vmem:[%s2627_s15 + $0x71] sm:$0x1] %vm464_vm4, %v594_v54  ;;  %v845_v62 = vrot.slane %v834_v56, %v2615_v21 }
 0x258   : > { %v707_v63 = vrot.slane %v693_v59, %v2615_v21  ;;  %v708_v0 = vcombine.high %v700_v60, %v700_v60  ;;  %v716_v1 = vrot.slane %v700_v60, %v2615_v21  ;;  %v852_v3 = vrot.slane %v838_v61, %v2615_v21 }
 0x259   : > { %v853_v5 = vcombine.high %v845_v62, %v845_v62  ;;  %v861_v6 = vrot.slane %v845_v62, %v2615_v21 }
 0x25a   : > { %v709_v7 = vcombine.high %v707_v63, %v707_v63  ;;  %v723_v8 = vrot.slane %v707_v63, %v2615_v21  ;;  %v730_v9 = vrot.slane %v708_v0, %v2615_v21  ;;  %v738_v10 = vcombine.high %v716_v1, %v716_v1  ;;  %750 = vst.msk [vmem:[%s2627_s15 + $0x2] sm:$0x1] %vm464_vm4, %v716_v1 }
 0x25b   : > { %v854_v11 = vcombine.high %v852_v3, %v852_v3  ;;  %v868_v12 = vrot.slane %v852_v3, %v2615_v21  ;;  %v875_v13 = vrot.slane %v853_v5, %v2615_v21  ;;  %v883_v14 = vcombine.high %v861_v6, %v861_v6  ;;  %895 = vst.msk [vmem:[%s2627_s15 + $0x3] sm:$0x1] %vm464_vm4, %v861_v6 }
 0x25c   : > { %v737_v15 = vrot.slane %v709_v7, %v2615_v21  ;;  %v739_v2 = vcombine.high %v723_v8, %v723_v8  ;;  %v740_v16 = vcombine.high %v730_v9, %v730_v9  ;;  %751 = vst.msk [vmem:[%s2627_s15 + $0x12] sm:$0x1] %vm464_vm4, %v730_v9  ;;  %752 = vst.msk [vmem:[%s2627_s15 + $0x22] sm:$0x1] %vm464_vm4, %v738_v10 }
 0x25d   : > { %754 = vst.msk [vmem:[%s2627_s15 + $0x42] sm:$0x1] %vm464_vm4, %v723_v8  ;;  %v882_v17 = vrot.slane %v854_v11, %v2615_v21  ;;  %v884_v18 = vcombine.high %v868_v12, %v868_v12  ;;  %v885_v19 = vcombine.high %v875_v13, %v875_v13  ;;  %896 = vst.msk [vmem:[%s2627_s15 + $0x13] sm:$0x1] %vm464_vm4, %v875_v13 }
 0x25e   : > { %897 = vst.msk [vmem:[%s2627_s15 + $0x23] sm:$0x1] %vm464_vm4, %v883_v14  ;;  %899 = vst.msk [vmem:[%s2627_s15 + $0x43] sm:$0x1] %vm464_vm4, %v868_v12  ;;  %v741_v4 = vcombine.high %v737_v15, %v737_v15  ;;  %v974_v22 = vpop.f32.mrb[4].mxu1  ;;  %v1112_v23 = vpop.f32.mrb[10].mxu0 }
 0x25f   : > { %753 = vst.msk [vmem:[%s2627_s15 + $0x32] sm:$0x1] %vm464_vm4, %v740_v16  ;;  %755 = vst.msk [vmem:[%s2627_s15 + $0x52] sm:$0x1] %vm464_vm4, %v737_v15  ;;  %v886_v24 = vcombine.high %v882_v17, %v882_v17  ;;  %v975_v25 = vadd.f32 %v974_v22, %v2612_v20  ;;  %v1113_v26 = vadd.f32 %v1112_v23, %v2612_v20  ;;  %v2103_v27 = vpop.f32.mrb[5].mxu1  ;;  %v2116_v28 = vpop.f32.mrb[11].mxu0 }
 0x260   : > { %756 = vst.msk [vmem:[%s2627_s15 + $0x62] sm:$0x1] %vm464_vm4, %v739_v2  ;;  %898 = vst.msk [vmem:[%s2627_s15 + $0x33] sm:$0x1] %vm464_vm4, %v885_v19 }
 0x261   : > { %900 = vst.msk [vmem:[%s2627_s15 + $0x53] sm:$0x1] %vm464_vm4, %v882_v17  ;;  %901 = vst.msk [vmem:[%s2627_s15 + $0x63] sm:$0x1] %vm464_vm4, %v884_v18  ;;  %v979_v29 = vcombine.high %v975_v25, %v975_v25  ;;  %v986_v30 = vrot.slane %v975_v25, %v2615_v21  ;;  %v1117_v31 = vcombine.high %v1113_v26, %v1113_v26 }
 0x262   : > { %757 = vst.msk [vmem:[%s2627_s15 + $0x72] sm:$0x1] %vm464_vm4, %v741_v4  ;;  %902 = vst.msk [vmem:[%s2627_s15 + $0x73] sm:$0x1] %vm464_vm4, %v886_v24  ;;  %v1124_v32 = vrot.slane %v1113_v26, %v2615_v21 }
 0x263   : > { %v993_v33 = vrot.slane %v979_v29, %v2615_v21  ;;  %v994_v34 = vcombine.high %v986_v30, %v986_v30  ;;  %v1002_v35 = vrot.slane %v986_v30, %v2615_v21  ;;  %v1131_v36 = vrot.slane %v1117_v31, %v2615_v21 }
 0x264   : > { %v1132_v37 = vcombine.high %v1124_v32, %v1124_v32  ;;  %v1140_v38 = vrot.slane %v1124_v32, %v2615_v21 }
 0x265   : > { %v995_v39 = vcombine.high %v993_v33, %v993_v33  ;;  %v1009_v40 = vrot.slane %v993_v33, %v2615_v21  ;;  %v1016_v41 = vrot.slane %v994_v34, %v2615_v21  ;;  %v1024_v42 = vcombine.high %v1002_v35, %v1002_v35  ;;  %1036 = vst.msk [vmem:[%s2627_s15 + $0x4] sm:$0x1] %vm464_vm4, %v1002_v35 }
 0x266   : > { %v1133_v43 = vcombine.high %v1131_v36, %v1131_v36  ;;  %v1147_v44 = vrot.slane %v1131_v36, %v2615_v21  ;;  %v1154_v45 = vrot.slane %v1132_v37, %v2615_v21  ;;  %v1162_v46 = vcombine.high %v1140_v38, %v1140_v38  ;;  %1174 = vst.msk [vmem:[%s2627_s15 + $0x5] sm:$0x1] %vm464_vm4, %v1140_v38 }
 0x267   : > { %v1023_v47 = vrot.slane %v995_v39, %v2615_v21  ;;  %v1025_v48 = vcombine.high %v1009_v40, %v1009_v40  ;;  %v1026_v49 = vcombine.high %v1016_v41, %v1016_v41  ;;  %1037 = vst.msk [vmem:[%s2627_s15 + $0x14] sm:$0x1] %vm464_vm4, %v1016_v41  ;;  %1038 = vst.msk [vmem:[%s2627_s15 + $0x24] sm:$0x1] %vm464_vm4, %v1024_v42 }
 0x268   : > { %1040 = vst.msk [vmem:[%s2627_s15 + $0x44] sm:$0x1] %vm464_vm4, %v1009_v40  ;;  %v1161_v50 = vrot.slane %v1133_v43, %v2615_v21  ;;  %v1163_v51 = vcombine.high %v1147_v44, %v1147_v44  ;;  %v1164_v52 = vcombine.high %v1154_v45, %v1154_v45  ;;  %1175 = vst.msk [vmem:[%s2627_s15 + $0x15] sm:$0x1] %vm464_vm4, %v1154_v45 }
 0x269   : > { %1176 = vst.msk [vmem:[%s2627_s15 + $0x25] sm:$0x1] %vm464_vm4, %v1162_v46  ;;  %1178 = vst.msk [vmem:[%s2627_s15 + $0x45] sm:$0x1] %vm464_vm4, %v1147_v44  ;;  %v1027_v53 = vcombine.high %v1023_v47, %v1023_v47  ;;  %v1259_v54 = vpop.f32.mrb[6].mxu1  ;;  %v1404_v55 = vpop.f32.mrb[12].mxu0 }
 0x26a   : > { %1039 = vst.msk [vmem:[%s2627_s15 + $0x34] sm:$0x1] %vm464_vm4, %v1026_v49  ;;  %1041 = vst.msk [vmem:[%s2627_s15 + $0x54] sm:$0x1] %vm464_vm4, %v1023_v47  ;;  %v1165_v56 = vcombine.high %v1161_v50, %v1161_v50  ;;  %v1260_v57 = vadd.f32 %v1259_v54, %v2612_v20  ;;  %v1405_v58 = vadd.f32 %v1404_v55, %v2612_v20  ;;  %v2129_v59 = vpop.f32.mrb[7].mxu1  ;;  %v2142_v60 = vpop.f32.mrb[13].mxu0 }
 0x26b   : > { %1042 = vst.msk [vmem:[%s2627_s15 + $0x64] sm:$0x1] %vm464_vm4, %v1025_v48  ;;  %1177 = vst.msk [vmem:[%s2627_s15 + $0x35] sm:$0x1] %vm464_vm4, %v1164_v52 }
 0x26c   : > { %1179 = vst.msk [vmem:[%s2627_s15 + $0x55] sm:$0x1] %vm464_vm4, %v1161_v50  ;;  %1180 = vst.msk [vmem:[%s2627_s15 + $0x65] sm:$0x1] %vm464_vm4, %v1163_v51  ;;  %v1264_v61 = vcombine.high %v1260_v57, %v1260_v57  ;;  %v1271_v62 = vrot.slane %v1260_v57, %v2615_v21  ;;  %v1409_v63 = vcombine.high %v1405_v58, %v1405_v58 }
 0x26d   : > { %1043 = vst.msk [vmem:[%s2627_s15 + $0x74] sm:$0x1] %vm464_vm4, %v1027_v53  ;;  %1181 = vst.msk [vmem:[%s2627_s15 + $0x75] sm:$0x1] %vm464_vm4, %v1165_v56  ;;  %v1416_v0 = vrot.slane %v1405_v58, %v2615_v21 }
 0x26e   : > { %v1278_v1 = vrot.slane %v1264_v61, %v2615_v21  ;;  %v1279_v3 = vcombine.high %v1271_v62, %v1271_v62  ;;  %v1287_v5 = vrot.slane %v1271_v62, %v2615_v21  ;;  %v1423_v6 = vrot.slane %v1409_v63, %v2615_v21 }
 0x26f   : > { %v1424_v7 = vcombine.high %v1416_v0, %v1416_v0  ;;  %v1432_v8 = vrot.slane %v1416_v0, %v2615_v21 }
 0x270   : > { %v1280_v9 = vcombine.high %v1278_v1, %v1278_v1  ;;  %v1294_v10 = vrot.slane %v1278_v1, %v2615_v21  ;;  %v1301_v11 = vrot.slane %v1279_v3, %v2615_v21  ;;  %v1309_v12 = vcombine.high %v1287_v5, %v1287_v5  ;;  %1321 = vst.msk [vmem:[%s2627_s15 + $0x6] sm:$0x1] %vm464_vm4, %v1287_v5 }
 0x271   : > { %v1425_v13 = vcombine.high %v1423_v6, %v1423_v6  ;;  %v1439_v14 = vrot.slane %v1423_v6, %v2615_v21  ;;  %v1446_v15 = vrot.slane %v1424_v7, %v2615_v21  ;;  %v1454_v2 = vcombine.high %v1432_v8, %v1432_v8  ;;  %1466 = vst.msk [vmem:[%s2627_s15 + $0x7] sm:$0x1] %vm464_vm4, %v1432_v8 }
 0x272   : > { %v1308_v16 = vrot.slane %v1280_v9, %v2615_v21  ;;  %v1310_v17 = vcombine.high %v1294_v10, %v1294_v10  ;;  %v1311_v18 = vcombine.high %v1301_v11, %v1301_v11  ;;  %1322 = vst.msk [vmem:[%s2627_s15 + $0x16] sm:$0x1] %vm464_vm4, %v1301_v11  ;;  %1323 = vst.msk [vmem:[%s2627_s15 + $0x26] sm:$0x1] %vm464_vm4, %v1309_v12 }
 0x273   : > { %1325 = vst.msk [vmem:[%s2627_s15 + $0x46] sm:$0x1] %vm464_vm4, %v1294_v10  ;;  %v1453_v19 = vrot.slane %v1425_v13, %v2615_v21  ;;  %v1455_v4 = vcombine.high %v1439_v14, %v1439_v14  ;;  %v1456_v22 = vcombine.high %v1446_v15, %v1446_v15  ;;  %1467 = vst.msk [vmem:[%s2627_s15 + $0x17] sm:$0x1] %vm464_vm4, %v1446_v15  ;;  %v1545_v23 = vpop.f32.mrb[8].mxu1  ;;  %v1683_v24 = vpop.f32.mrb[14].mxu0 }
 0x274   : > { %1468 = vst.msk [vmem:[%s2627_s15 + $0x27] sm:$0x1] %vm464_vm4, %v1454_v2  ;;  %1470 = vst.msk [vmem:[%s2627_s15 + $0x47] sm:$0x1] %vm464_vm4, %v1439_v14  ;;  %v1312_v25 = vcombine.high %v1308_v16, %v1308_v16  ;;  %v1546_v26 = vadd.f32 %v1545_v23, %v2612_v20  ;;  %v1684_v27 = vadd.f32 %v1683_v24, %v2612_v20  ;;  %v2155_v28 = vpop.f32.mrb[9].mxu1  ;;  %v2168_v29 = vpop.f32.mrb[15].mxu0 }
 0x275   : > { %1324 = vst.msk [vmem:[%s2627_s15 + $0x36] sm:$0x1] %vm464_vm4, %v1311_v18  ;;  %1326 = vst.msk [vmem:[%s2627_s15 + $0x56] sm:$0x1] %vm464_vm4, %v1308_v16  ;;  %v1457_v30 = vcombine.high %v1453_v19, %v1453_v19 }
 0x276   : > { %1327 = vst.msk [vmem:[%s2627_s15 + $0x66] sm:$0x1] %vm464_vm4, %v1310_v17  ;;  %1469 = vst.msk [vmem:[%s2627_s15 + $0x37] sm:$0x1] %vm464_vm4, %v1456_v22  ;;  %v1550_v31 = vcombine.high %v1546_v26, %v1546_v26  ;;  %v1557_v32 = vrot.slane %v1546_v26, %v2615_v21  ;;  %v1688_v33 = vcombine.high %v1684_v27, %v1684_v27 }
 0x277   : > { %1471 = vst.msk [vmem:[%s2627_s15 + $0x57] sm:$0x1] %vm464_vm4, %v1453_v19  ;;  %1472 = vst.msk [vmem:[%s2627_s15 + $0x67] sm:$0x1] %vm464_vm4, %v1455_v4  ;;  %v1695_v34 = vrot.slane %v1684_v27, %v2615_v21 }
 0x278   : > { %1328 = vst.msk [vmem:[%s2627_s15 + $0x76] sm:$0x1] %vm464_vm4, %v1312_v25  ;;  %1473 = vst.msk [vmem:[%s2627_s15 + $0x77] sm:$0x1] %vm464_vm4, %v1457_v30  ;;  %v1564_v20 = vrot.slane %v1550_v31, %v2615_v21  ;;  %v1565_v35 = vcombine.high %v1557_v32, %v1557_v32  ;;  %v1573_v36 = vrot.slane %v1557_v32, %v2615_v21 }
 0x279   : > { %v1702_v37 = vrot.slane %v1688_v33, %v2615_v21  ;;  %v1703_v38 = vcombine.high %v1695_v34, %v1695_v34  ;;  %v1711_v39 = vrot.slane %v1695_v34, %v2615_v21 }
 0x27a   : > { %v1566_v40 = vcombine.high %v1564_v20, %v1564_v20  ;;  %v1580_v41 = vrot.slane %v1564_v20, %v2615_v21  ;;  %v1587_v42 = vrot.slane %v1565_v35, %v2615_v21  ;;  %v1595_v43 = vcombine.high %v1573_v36, %v1573_v36  ;;  %1607 = vst.msk [vmem:[%s2627_s15 + $0x8] sm:$0x1] %vm464_vm4, %v1573_v36  ;;  %v1826_v57 = vld [vmem:[%s2627_s15 + $0x10] sm:$0xff] (%p2441_p5) }
 0x27b   : > { %v1704_v44 = vcombine.high %v1702_v37, %v1702_v37  ;;  %v1718_v45 = vrot.slane %v1702_v37, %v2615_v21  ;;  %v1725_v46 = vrot.slane %v1703_v38, %v2615_v21  ;;  %v1733_v47 = vcombine.high %v1711_v39, %v1711_v39  ;;  %1745 = vst.msk [vmem:[%s2627_s15 + $0x9] sm:$0x1] %vm464_vm4, %v1711_v39  ;;  %v1830_v59 = vld [vmem:[%s2627_s15 + $0x20] sm:$0xff] (%p2441_p5) }
 0x27c   : > { %v1594_v48 = vrot.slane %v1566_v40, %v2615_v21  ;;  %v1596_v49 = vcombine.high %v1580_v41, %v1580_v41  ;;  %v1597_v50 = vcombine.high %v1587_v42, %v1587_v42  ;;  %1608 = vst.msk [vmem:[%s2627_s15 + $0x18] sm:$0x1] %vm464_vm4, %v1587_v42  ;;  %1609 = vst.msk [vmem:[%s2627_s15 + $0x28] sm:$0x1] %vm464_vm4, %v1595_v43  ;;  %1759 = sbr.rel (!%p2441_p5) target bundleno = 651 (0x28b), region = 40  ;;  %v1838_v63 = vld [vmem:[%s2627_s15 + $0x40] sm:$0xff] (%p2441_p5) }
 0x27d   : > { %1611 = vst.msk [vmem:[%s2627_s15 + $0x48] sm:$0x1] %vm464_vm4, %v1580_v41  ;;  %v1732_v51 = vrot.slane %v1704_v44, %v2615_v21  ;;  %v1734_v52 = vcombine.high %v1718_v45, %v1718_v45  ;;  %v1735_v53 = vcombine.high %v1725_v46, %v1725_v46  ;;  %1746 = vst.msk [vmem:[%s2627_s15 + $0x19] sm:$0x1] %vm464_vm4, %v1725_v46  ;;  %v1822_v21 = vld [vmem:[%s2627_s15] sm:$0xff] (%p2441_p5)  ;;  %v1834_v61 = vld [vmem:[%s2627_s15 + $0x30] sm:$0xff] (%p2441_p5) }
 0x27e   : > { %1747 = vst.msk [vmem:[%s2627_s15 + $0x29] sm:$0x1] %vm464_vm4, %v1733_v47  ;;  %1749 = vst.msk [vmem:[%s2627_s15 + $0x49] sm:$0x1] %vm464_vm4, %v1718_v45  ;;  %v1598_v54 = vcombine.high %v1594_v48, %v1594_v48  ;;  %v1842_v1 = vld [vmem:[%s2627_s15 + $0x50] sm:$0xff] (%p2441_p5)  ;;  %v1846_v5 = vld [vmem:[%s2627_s15 + $0x60] sm:$0xff] (%p2441_p5) }
 0x27f   : > { %1610 = vst.msk [vmem:[%s2627_s15 + $0x38] sm:$0x1] %vm464_vm4, %v1597_v50  ;;  %1612 = vst.msk [vmem:[%s2627_s15 + $0x58] sm:$0x1] %vm464_vm4, %v1594_v48  ;;  %v1736_v55 = vcombine.high %v1732_v51, %v1732_v51  ;;  %v1850_v7 = vld [vmem:[%s2627_s15 + $0x70] sm:$0xff] (%p2441_p5) }
 0x280   : > { %1613 = vst.msk [vmem:[%s2627_s15 + $0x68] sm:$0x1] %vm464_vm4, %v1596_v49  ;;  %1748 = vst.msk [vmem:[%s2627_s15 + $0x39] sm:$0x1] %vm464_vm4, %v1735_v53 }
 0x281   : > { %1750 = vst.msk [vmem:[%s2627_s15 + $0x59] sm:$0x1] %vm464_vm4, %v1732_v51  ;;  %1751 = vst.msk [vmem:[%s2627_s15 + $0x69] sm:$0x1] %vm464_vm4, %v1734_v52 }
 0x282   : > { %1614 = vst.msk [vmem:[%s2627_s15 + $0x78] sm:$0x1] %vm464_vm4, %v1598_v54  ;;  %1752 = vst.msk [vmem:[%s2627_s15 + $0x79] sm:$0x1] %vm464_vm4, %v1736_v55  ;;  %v1824_v56 = vld [vmem:[%s2627_s15 + $0x8] sm:$0xff] (%p2441_p5) }
 0x283   : > { %1823 = vst [vmem:[%s1764_s18] sm:$0xff] %v1822_v21  ;;  %1825 = vst [vmem:[%s1764_s18 + $0x8] sm:$0xff] %v1824_v56 }
 0x284   : > { %v1828_v58 = vld [vmem:[%s2627_s15 + $0x18] sm:$0xff]  ;;  %1827 = vst [vmem:[%s1764_s18 + $0x30] sm:$0xff] %v1826_v57  ;;  %1831 = vst [vmem:[%s1764_s18 + $0x60] sm:$0xff] %v1830_v59 }
 0x285   : > { %v1832_v60 = vld [vmem:[%s2627_s15 + $0x28] sm:$0xff]  ;;  %1829 = vst [vmem:[%s1764_s18 + $0x38] sm:$0xff] %v1828_v58  ;;  %1835 = vst [vmem:[%s1764_s18 + $0x90] sm:$0xff] %v1834_v61 }
 0x286   : > { %v1840_v0 = vld [vmem:[%s2627_s15 + $0x48] sm:$0xff]  ;;  %1833 = vst [vmem:[%s1764_s18 + $0x68] sm:$0xff] %v1832_v60  ;;  %1839 = vst [vmem:[%s1764_s18 + $0xc0] sm:$0xff] %v1838_v63 }
 0x287   : > { %v1836_v62 = vld [vmem:[%s2627_s15 + $0x38] sm:$0xff]  ;;  %1841 = vst [vmem:[%s1764_s18 + $0xc8] sm:$0xff] %v1840_v0  ;;  %1843 = vst [vmem:[%s1764_s18 + $0xf0] sm:$0xff] %v1842_v1 }
 0x288   : > { %v1844_v3 = vld [vmem:[%s2627_s15 + $0x58] sm:$0xff]  ;;  %v1848_v6 = vld [vmem:[%s2627_s15 + $0x68] sm:$0xff]  ;;  %1837 = vst [vmem:[%s1764_s18 + $0x98] sm:$0xff] %v1836_v62  ;;  %1847 = vst [vmem:[%s1764_s18 + $0x120] sm:$0xff] %v1846_v5 }
 0x289   : > { %1845 = vst [vmem:[%s1764_s18 + $0xf8] sm:$0xff] %v1844_v3  ;;  %1849 = vst [vmem:[%s1764_s18 + $0x128] sm:$0xff] %v1848_v6  ;;  %v1852_v8 = vld [vmem:[%s2627_s15 + $0x78] sm:$0xff] }
 0x28a   : > { %1851 = vst [vmem:[%s1764_s18 + $0x150] sm:$0xff] %v1850_v7  ;;  %1853 = vst [vmem:[%s1764_s18 + $0x158] sm:$0xff] %v1852_v8 }
 0x28b PF: > { %s14_s21 = sadd.s32 1, %s2361_s21   ;;  %s2899_s15 = smov %s2341_s16 }
 0x28c   : > { %p11_p10 = scmp.ge.s32.totalorder %s14_s21, 8   ;;  %s2900_s16 = smov %s2452_s30 }
 0x28d   : > { %s2901_s17 = smov %s2353_s19  ;;  %s2902_s18 = smov %s2357_s20 }
 0x28e   : > { %s2903_s19 = smov %s2906_s22  ;;  %s2904_s20 = smov %s2910_s23 }
 0x28f   :  { %13 = sbr.rel (!%p11_p10) target bundleno = 4 (0x4), region = 105 }

</bundles_post_ra>
